<compile_context>
chip_gen: v6e
topology: v6e:2x2x1
jax: 0.10.0
libtpu: 0.0.40
codegen_flags: <defaults>
</compile_context>

<pallas_src>
import jax
import jax.numpy as jnp
from jax.experimental import pallas as pl
from jax.experimental.pallas import tpu as pltpu

HIDDEN = 64      # nn.LSTM(hidden_size=hidden) -- module default
OUT_LEN = 16     # TODO(synk): REG_MINUTES depends on REG_START/REG_END not shown; using 16.
OUT_PAD = ((OUT_LEN + 127) // 128) * 128   # lane-dense fc output (unmasked vst)


def lstm_fc_kernel(g0in_ref, whh0_ref, wih1_ref, whh1_ref, b1_ref,
                   wfc_ref, bfc_ref, out_ref):
    # g0in : (T, B, 4H)  hoisted layer-0 input contribution  x[t]*Wih0 + b0
    # whh0 : (H, 4H)     layer-0 recurrent weights (transposed, gate order [i,f,o,g])
    # wih1 : (H, 4H)     layer-1 input weights    (transposed)
    # whh1 : (H, 4H)     layer-1 recurrent weights (transposed)
    # b1   : (1, 4H)     layer-1 bias_ih + bias_hh
    # wfc  : (H, OUT_PAD)  fc weight (transposed, lane-padded), bfc: (1, OUT_PAD)
    # out  : (B, OUT_PAD)
    T, B, _ = g0in_ref.shape
    H = whh0_ref.shape[0]
    PREC = jax.lax.Precision.DEFAULT   # pin single-pass bf16 MXU, f32 accumulation

    whh0 = whh0_ref[...]
    wih1 = wih1_ref[...]
    whh1 = whh1_ref[...]
    b1 = b1_ref[...]

    def gates_to_hc(gates, c):
        # gate order [i, f, o, g]: one (B,3H) sigmoid + one (B,H) tanh (EUP),
        # then static lane slices.
        sig = jax.nn.sigmoid(gates[:, :3 * H])
        g = jnp.tanh(gates[:, 3 * H:])
        i = sig[:, 0 * H:1 * H]
        f = sig[:, 1 * H:2 * H]
        o = sig[:, 2 * H:3 * H]
        c_new = f * c + i * g
        h_new = o * jnp.tanh(c_new)
        return h_new, c_new

    def step(t, carry):
        h1, c1, h2, c2 = carry
        # layer-1 recurrent half: depends only on last step's h2, so it overlaps
        # with all of layer-0's matmul + gate work (no wait on h1n).
        g1_rec = jnp.dot(h2, whh1, precision=PREC,
                         preferred_element_type=jnp.float32) + b1
        # layer 0: input term hoisted to the wrapper; only the recurrent matmul
        # remains on the serial critical path.
        g0 = g0in_ref[t] + jnp.dot(h1, whh0, precision=PREC,
                                   preferred_element_type=jnp.float32)
        h1n, c1n = gates_to_hc(g0, c1)
        # layer 1: input half (no concat -> no XLU roll on the critical path).
        g1 = g1_rec + jnp.dot(h1n, wih1, precision=PREC,
                              preferred_element_type=jnp.float32)
        h2n, c2n = gates_to_hc(g1, c2)
        return (h1n, c1n, h2n, c2n)

    z = jnp.zeros((B, H), jnp.float32)
    # Small per-block batch -> fully unroll (LLO overlaps loads/MXU pushes across
    # iterations).  Large per-block batch -> bounded unroll to keep vreg pressure safe.
    unroll = True if B <= 64 else 2
    _, _, h2, _ = jax.lax.fori_loop(0, T, step, (z, z, z, z), unroll=unroll)

    # fc on the last timestep's top-layer hidden state (lane-padded -> unmasked store).
    out_ref[...] = (jnp.dot(h2, wfc_ref[...], precision=PREC,
                            preferred_element_type=jnp.float32) + bfc_ref[...])


def init_params(key, hidden=HIDDEN, out_len=OUT_LEN):
    """Deterministic init matching PyTorch parameter shapes (gate order [i,f,g,o])."""
    k = 1.0 / jnp.sqrt(jnp.float32(hidden))
    keys = jax.random.split(key, 10)
    u = lambda kk, shape: jax.random.uniform(kk, shape, jnp.float32, -k, k)
    return {
        "wih0": u(keys[0], (4 * hidden, 1)),
        "whh0": u(keys[1], (4 * hidden, hidden)),
        "bih0": u(keys[2], (4 * hidden,)),
        "bhh0": u(keys[3], (4 * hidden,)),
        "wih1": u(keys[4], (4 * hidden, hidden)),
        "whh1": u(keys[5], (4 * hidden, hidden)),
        "bih1": u(keys[6], (4 * hidden,)),
        "bhh1": u(keys[7], (4 * hidden,)),
        "wfc": u(keys[8], (out_len, hidden)),
        "bfc": u(keys[9], (out_len,)),
    }


def pack_params(p, hidden=HIDDEN, out_len=OUT_LEN):
    """One-time weight packing: gate permutation [i,f,g,o]->[i,f,o,g], transposes,
    bias sums, and fc lane-padding.  Done once at init, not per forward call."""
    H = hidden

    def perm(w):   # reorder along the 4H (leading) axis: [i,f,g,o] -> [i,f,o,g]
        return jnp.concatenate([w[:2 * H], w[3 * H:4 * H], w[2 * H:3 * H]], axis=0)

    wih0 = perm(p["wih0"]).T                                   # (1, 4H)
    whh0 = perm(p["whh0"]).T                                   # (H, 4H)
    b0 = perm(p["bih0"] + p["bhh0"]).reshape(1, 4 * H)
    wih1 = perm(p["wih1"]).T                                   # (H, 4H)
    whh1 = perm(p["whh1"]).T                                   # (H, 4H)
    b1 = perm(p["bih1"] + p["bhh1"]).reshape(1, 4 * H)
    wfc = jnp.zeros((H, OUT_PAD), jnp.float32).at[:, :out_len].set(p["wfc"].T)
    bfc = jnp.zeros((1, OUT_PAD), jnp.float32).at[:, :out_len].set(
        p["bfc"].reshape(1, -1))
    return {"wih0": wih0, "whh0": whh0, "b0": b0,
            "wih1": wih1, "whh1": whh1, "b1": b1, "wfc": wfc, "bfc": bfc}


@jax.jit
def lstm_model_forward(x, packed):
    """x: (B, T, 1) float32 (PyTorch batch_first).  Returns (B, OUT_LEN, 1)."""
    B, T, _ = x.shape
    H = HIDDEN

    # Hoisted layer-0 input contribution (h/c independent): computed by XLA under jit,
    # so the kernel's serial recurrence only carries the recurrent matmuls.
    x_tm = jnp.transpose(x[..., 0], (1, 0)).astype(jnp.float32)          # (T, B)
    g0in = x_tm[:, :, None] * packed["wih0"][None] + packed["b0"][None]  # (T, B, 4H)

    # Batch blocking: single block for small B; blocks of 128 rows (parallel grid ->
    # sharded across v7x's two TensorCores) once B grows.
    tb = B if B <= 128 else 128
    Bp = ((B + tb - 1) // tb) * tb
    if Bp != B:
        g0in = jnp.pad(g0in, ((0, 0), (0, Bp - B), (0, 0)))

    # TODO(synk): if T*B*4H*4 bytes ever approaches the scoped-VMEM limit (~32 MiB),
    # block over T with a grid axis and persistent h/c scratch, and set vmem_limit_bytes.
    out = pl.pallas_call(
        lstm_fc_kernel,
        out_shape=jax.ShapeDtypeStruct((Bp, OUT_PAD), jnp.float32),
        grid=(Bp // tb,),
        in_specs=[
            pl.BlockSpec((T, tb, 4 * H), lambda b: (0, b, 0)),   # g0in
            pl.BlockSpec((H, 4 * H), lambda b: (0, 0)),          # whh0
            pl.BlockSpec((H, 4 * H), lambda b: (0, 0)),          # wih1
            pl.BlockSpec((H, 4 * H), lambda b: (0, 0)),          # whh1
            pl.BlockSpec((1, 4 * H), lambda b: (0, 0)),          # b1
            pl.BlockSpec((H, OUT_PAD), lambda b: (0, 0)),        # wfc
            pl.BlockSpec((1, OUT_PAD), lambda b: (0, 0)),        # bfc
        ],
        out_specs=pl.BlockSpec((tb, OUT_PAD), lambda b: (b, 0)),
        compiler_params=pltpu.CompilerParams(dimension_semantics=("parallel",)),
    )(g0in, packed["whh0"], packed["wih1"], packed["whh1"], packed["b1"],
      packed["wfc"], packed["bfc"])

    return out[:B, :OUT_LEN, None]                               # (B, OUT_LEN, 1)


def lstm_model_ref(x, p):
    """Pure-JAX reference reproducing nn.LSTM(num_layers=2) + fc + unsqueeze(-1)."""
    B, T, _ = x.shape
    H = HIDDEN

    def cell(x_in, h, c, wih, whh, bih, bhh):
        g = x_in @ wih.T + h @ whh.T + bih + bhh
        i = jax.nn.sigmoid(g[:, :H])
        f = jax.nn.sigmoid(g[:, H:2 * H])
        gg = jnp.tanh(g[:, 2 * H:3 * H])
        o = jax.nn.sigmoid(g[:, 3 * H:])
        c = f * c + i * gg
        h = o * jnp.tanh(c)
        return h, c

    h1 = c1 = h2 = c2 = jnp.zeros((B, H), jnp.float32)
    for t in range(T):
        h1, c1 = cell(x[:, t, :], h1, c1, p["wih0"], p["whh0"], p["bih0"], p["bhh0"])
        h2, c2 = cell(h1, h2, c2, p["wih1"], p["whh1"], p["bih1"], p["bhh1"])
    out = h2 @ p["wfc"].T + p["bfc"]
    return out[:, :, None]


if __name__ == "__main__":
    key = jax.random.PRNGKey(0)
    k_param, k_x = jax.random.split(key)

    B, T = 2, 8
    params = init_params(k_param)
    packed = pack_params(params)                     # one-time weight packing
    x = jax.random.normal(k_x, (B, T, 1), dtype=jnp.float32)

    y = jax.block_until_ready(lstm_model_forward(x, packed))
    y_ref = lstm_model_ref(x, params)

    assert y.shape == (B, OUT_LEN, 1), y.shape
    err = float(jnp.max(jnp.abs(y - y_ref)))
    assert jnp.allclose(y, y_ref, atol=1e-4, rtol=1e-4), err

    print("KERNEL_OK")
</pallas_src>

<mosaic_0001>
module attributes {stable_mosaic.version = 11 : i64} {
  func.func @lstm_fc_kernel(%arg0: i32, %arg1: memref<8x2x256xf32, #tpu.memory_space<vmem>>, %arg2: memref<64x256xf32, #tpu.memory_space<vmem>>, %arg3: memref<64x256xf32, #tpu.memory_space<vmem>>, %arg4: memref<64x256xf32, #tpu.memory_space<vmem>>, %arg5: memref<1x256xf32, #tpu.memory_space<vmem>>, %arg6: memref<64x128xf32, #tpu.memory_space<vmem>>, %arg7: memref<1x128xf32, #tpu.memory_space<vmem>>, %arg8: memref<2x128xf32, #tpu.memory_space<vmem>>) attributes {dimension_semantics = [#tpu.dimension_semantics<parallel>], iteration_bounds = array<i64: 1>, scalar_prefetch = 0 : i64, scratch_operands = 0 : i64, tpu.core_type = #tpu.core_type<tc>, window_params = [{transform_indices = @transform_0, window_bounds = array<i64: 8, 2, 256>}, {pipeline_mode = #tpu.pipeline_mode<synchronous>, transform_indices = @transform_1, window_bounds = array<i64: 64, 256>}, {pipeline_mode = #tpu.pipeline_mode<synchronous>, transform_indices = @transform_2, window_bounds = array<i64: 64, 256>}, {pipeline_mode = #tpu.pipeline_mode<synchronous>, transform_indices = @transform_3, window_bounds = array<i64: 64, 256>}, {pipeline_mode = #tpu.pipeline_mode<synchronous>, transform_indices = @transform_4, window_bounds = array<i64: 1, 256>}, {pipeline_mode = #tpu.pipeline_mode<synchronous>, transform_indices = @transform_5, window_bounds = array<i64: 64, 128>}, {pipeline_mode = #tpu.pipeline_mode<synchronous>, transform_indices = @transform_6, window_bounds = array<i64: 1, 128>}, {transform_indices = @transform_7, window_bounds = array<i64: 2, 128>}]} {
    %c0 = arith.constant 0 : index
    %c0_0 = arith.constant 0 : index
    %0 = vector.load %arg2[%c0, %c0_0] : memref<64x256xf32, #tpu.memory_space<vmem>>, vector<64x256xf32>
    %c0_1 = arith.constant 0 : index
    %c0_2 = arith.constant 0 : index
    %1 = vector.load %arg3[%c0_1, %c0_2] : memref<64x256xf32, #tpu.memory_space<vmem>>, vector<64x256xf32>
    %c0_3 = arith.constant 0 : index
    %c0_4 = arith.constant 0 : index
    %2 = vector.load %arg4[%c0_3, %c0_4] : memref<64x256xf32, #tpu.memory_space<vmem>>, vector<64x256xf32>
    %c0_5 = arith.constant 0 : index
    %c0_6 = arith.constant 0 : index
    %3 = vector.load %arg5[%c0_5, %c0_6] : memref<1x256xf32, #tpu.memory_space<vmem>>, vector<1x256xf32>
    %cst = arith.constant 0.000000e+00 : f32
    %4 = vector.broadcast %cst : f32 to vector<2x64xf32>
    %c0_i32 = arith.constant 0 : i32
    %cst_7 = arith.constant dense<0.000000e+00> : vector<2x256xf32>
    %5 = tpu.matmul %4, %2, %cst_7 {dimension_numbers = #tpu.dot_dimension_numbers<[1], [0], [0], [1], [0, 0, 1, 1], [], []>} : vector<2x64xf32>, vector<64x256xf32>, vector<2x256xf32> -> vector<2x256xf32>
    %6 = vector.broadcast %3 : vector<1x256xf32> to vector<2x256xf32>
    %7 = arith.addf %5, %6 : vector<2x256xf32>
    %8 = arith.index_cast %c0_i32 : i32 to index
    %c0_8 = arith.constant 0 : index
    %c0_9 = arith.constant 0 : index
    %9 = vector.load %arg1[%8, %c0_8, %c0_9] : memref<8x2x256xf32, #tpu.memory_space<vmem>>, vector<1x2x256xf32>
    %10 = vector.shape_cast %9 : vector<1x2x256xf32> to vector<2x256xf32>
    %cst_10 = arith.constant dense<0.000000e+00> : vector<2x256xf32>
    %11 = tpu.matmul %4, %0, %cst_10 {dimension_numbers = #tpu.dot_dimension_numbers<[1], [0], [0], [1], [0, 0, 1, 1], [], []>} : vector<2x64xf32>, vector<64x256xf32>, vector<2x256xf32> -> vector<2x256xf32>
    %12 = arith.addf %10, %11 : vector<2x256xf32>
    %13 = vector.extract_strided_slice %12 {offsets = [0, 0], sizes = [2, 192], strides = [1, 1]} : vector<2x256xf32> to vector<2x192xf32>
    %14 = arith.negf %13 : vector<2x192xf32>
    %15 = math.exp %14 : vector<2x192xf32>
    %cst_11 = arith.constant 1.000000e+00 : f32
    %16 = vector.broadcast %cst_11 : f32 to vector<2x192xf32>
    %17 = arith.addf %16, %15 : vector<2x192xf32>
    %18 = arith.divf %16, %17 : vector<2x192xf32>
    %19 = vector.extract_strided_slice %12 {offsets = [0, 192], sizes = [2, 64], strides = [1, 1]} : vector<2x256xf32> to vector<2x64xf32>
    %20 = math.tanh %19 : vector<2x64xf32>
    %21 = vector.extract_strided_slice %18 {offsets = [0, 0], sizes = [2, 64], strides = [1, 1]} : vector<2x192xf32> to vector<2x64xf32>
    %22 = vector.extract_strided_slice %18 {offsets = [0, 64], sizes = [2, 64], strides = [1, 1]} : vector<2x192xf32> to vector<2x64xf32>
    %23 = vector.extract_strided_slice %18 {offsets = [0, 128], sizes = [2, 64], strides = [1, 1]} : vector<2x192xf32> to vector<2x64xf32>
    %24 = arith.mulf %22, %4 : vector<2x64xf32>
    %25 = arith.mulf %21, %20 : vector<2x64xf32>
    %26 = arith.addf %24, %25 : vector<2x64xf32>
    %27 = math.tanh %26 : vector<2x64xf32>
    %28 = arith.mulf %23, %27 : vector<2x64xf32>
    %cst_12 = arith.constant dense<0.000000e+00> : vector<2x256xf32>
    %29 = tpu.matmul %28, %1, %cst_12 {dimension_numbers = #tpu.dot_dimension_numbers<[1], [0], [0], [1], [0, 0, 1, 1], [], []>} : vector<2x64xf32>, vector<64x256xf32>, vector<2x256xf32> -> vector<2x256xf32>
    %30 = arith.addf %7, %29 : vector<2x256xf32>
    %31 = vector.extract_strided_slice %30 {offsets = [0, 0], sizes = [2, 192], strides = [1, 1]} : vector<2x256xf32> to vector<2x192xf32>
    %32 = arith.negf %31 : vector<2x192xf32>
    %33 = math.exp %32 : vector<2x192xf32>
    %cst_13 = arith.constant 1.000000e+00 : f32
    %34 = vector.broadcast %cst_13 : f32 to vector<2x192xf32>
    %35 = arith.addf %34, %33 : vector<2x192xf32>
    %36 = arith.divf %34, %35 : vector<2x192xf32>
    %37 = vector.extract_strided_slice %30 {offsets = [0, 192], sizes = [2, 64], strides = [1, 1]} : vector<2x256xf32> to vector<2x64xf32>
    %38 = math.tanh %37 : vector<2x64xf32>
    %39 = vector.extract_strided_slice %36 {offsets = [0, 0], sizes = [2, 64], strides = [1, 1]} : vector<2x192xf32> to vector<2x64xf32>
    %40 = vector.extract_strided_slice %36 {offsets = [0, 64], sizes = [2, 64], strides = [1, 1]} : vector<2x192xf32> to vector<2x64xf32>
    %41 = vector.extract_strided_slice %36 {offsets = [0, 128], sizes = [2, 64], strides = [1, 1]} : vector<2x192xf32> to vector<2x64xf32>
    %42 = arith.mulf %40, %4 : vector<2x64xf32>
    %43 = arith.mulf %39, %38 : vector<2x64xf32>
    %44 = arith.addf %42, %43 : vector<2x64xf32>
    %45 = math.tanh %44 : vector<2x64xf32>
    %46 = arith.mulf %41, %45 : vector<2x64xf32>
    %c1_i32 = arith.constant 1 : i32
    %cst_14 = arith.constant dense<0.000000e+00> : vector<2x256xf32>
    %47 = tpu.matmul %46, %2, %cst_14 {dimension_numbers = #tpu.dot_dimension_numbers<[1], [0], [0], [1], [0, 0, 1, 1], [], []>} : vector<2x64xf32>, vector<64x256xf32>, vector<2x256xf32> -> vector<2x256xf32>
    %48 = vector.broadcast %3 : vector<1x256xf32> to vector<2x256xf32>
    %49 = arith.addf %47, %48 : vector<2x256xf32>
    %50 = arith.index_cast %c1_i32 : i32 to index
    %c0_15 = arith.constant 0 : index
    %c0_16 = arith.constant 0 : index
    %51 = vector.load %arg1[%50, %c0_15, %c0_16] : memref<8x2x256xf32, #tpu.memory_space<vmem>>, vector<1x2x256xf32>
    %52 = vector.shape_cast %51 : vector<1x2x256xf32> to vector<2x256xf32>
    %cst_17 = arith.constant dense<0.000000e+00> : vector<2x256xf32>
    %53 = tpu.matmul %28, %0, %cst_17 {dimension_numbers = #tpu.dot_dimension_numbers<[1], [0], [0], [1], [0, 0, 1, 1], [], []>} : vector<2x64xf32>, vector<64x256xf32>, vector<2x256xf32> -> vector<2x256xf32>
    %54 = arith.addf %52, %53 : vector<2x256xf32>
    %55 = vector.extract_strided_slice %54 {offsets = [0, 0], sizes = [2, 192], strides = [1, 1]} : vector<2x256xf32> to vector<2x192xf32>
    %56 = arith.negf %55 : vector<2x192xf32>
    %57 = math.exp %56 : vector<2x192xf32>
    %cst_18 = arith.constant 1.000000e+00 : f32
    %58 = vector.broadcast %cst_18 : f32 to vector<2x192xf32>
    %59 = arith.addf %58, %57 : vector<2x192xf32>
    %60 = arith.divf %58, %59 : vector<2x192xf32>
    %61 = vector.extract_strided_slice %54 {offsets = [0, 192], sizes = [2, 64], strides = [1, 1]} : vector<2x256xf32> to vector<2x64xf32>
    %62 = math.tanh %61 : vector<2x64xf32>
    %63 = vector.extract_strided_slice %60 {offsets = [0, 0], sizes = [2, 64], strides = [1, 1]} : vector<2x192xf32> to vector<2x64xf32>
    %64 = vector.extract_strided_slice %60 {offsets = [0, 64], sizes = [2, 64], strides = [1, 1]} : vector<2x192xf32> to vector<2x64xf32>
    %65 = vector.extract_strided_slice %60 {offsets = [0, 128], sizes = [2, 64], strides = [1, 1]} : vector<2x192xf32> to vector<2x64xf32>
    %66 = arith.mulf %64, %26 : vector<2x64xf32>
    %67 = arith.mulf %63, %62 : vector<2x64xf32>
    %68 = arith.addf %66, %67 : vector<2x64xf32>
    %69 = math.tanh %68 : vector<2x64xf32>
    %70 = arith.mulf %65, %69 : vector<2x64xf32>
    %cst_19 = arith.constant dense<0.000000e+00> : vector<2x256xf32>
    %71 = tpu.matmul %70, %1, %cst_19 {dimension_numbers = #tpu.dot_dimension_numbers<[1], [0], [0], [1], [0, 0, 1, 1], [], []>} : vector<2x64xf32>, vector<64x256xf32>, vector<2x256xf32> -> vector<2x256xf32>
    %72 = arith.addf %49, %71 : vector<2x256xf32>
    %73 = vector.extract_strided_slice %72 {offsets = [0, 0], sizes = [2, 192], strides = [1, 1]} : vector<2x256xf32> to vector<2x192xf32>
    %74 = arith.negf %73 : vector<2x192xf32>
    %75 = math.exp %74 : vector<2x192xf32>
    %cst_20 = arith.constant 1.000000e+00 : f32
    %76 = vector.broadcast %cst_20 : f32 to vector<2x192xf32>
    %77 = arith.addf %76, %75 : vector<2x192xf32>
    %78 = arith.divf %76, %77 : vector<2x192xf32>
    %79 = vector.extract_strided_slice %72 {offsets = [0, 192], sizes = [2, 64], strides = [1, 1]} : vector<2x256xf32> to vector<2x64xf32>
    %80 = math.tanh %79 : vector<2x64xf32>
    %81 = vector.extract_strided_slice %78 {offsets = [0, 0], sizes = [2, 64], strides = [1, 1]} : vector<2x192xf32> to vector<2x64xf32>
    %82 = vector.extract_strided_slice %78 {offsets = [0, 64], sizes = [2, 64], strides = [1, 1]} : vector<2x192xf32> to vector<2x64xf32>
    %83 = vector.extract_strided_slice %78 {offsets = [0, 128], sizes = [2, 64], strides = [1, 1]} : vector<2x192xf32> to vector<2x64xf32>
    %84 = arith.mulf %82, %44 : vector<2x64xf32>
    %85 = arith.mulf %81, %80 : vector<2x64xf32>
    %86 = arith.addf %84, %85 : vector<2x64xf32>
    %87 = math.tanh %86 : vector<2x64xf32>
    %88 = arith.mulf %83, %87 : vector<2x64xf32>
    %c2_i32 = arith.constant 2 : i32
    %cst_21 = arith.constant dense<0.000000e+00> : vector<2x256xf32>
    %89 = tpu.matmul %88, %2, %cst_21 {dimension_numbers = #tpu.dot_dimension_numbers<[1], [0], [0], [1], [0, 0, 1, 1], [], []>} : vector<2x64xf32>, vector<64x256xf32>, vector<2x256xf32> -> vector<2x256xf32>
    %90 = vector.broadcast %3 : vector<1x256xf32> to vector<2x256xf32>
    %91 = arith.addf %89, %90 : vector<2x256xf32>
    %92 = arith.index_cast %c2_i32 : i32 to index
    %c0_22 = arith.constant 0 : index
    %c0_23 = arith.constant 0 : index
    %93 = vector.load %arg1[%92, %c0_22, %c0_23] : memref<8x2x256xf32, #tpu.memory_space<vmem>>, vector<1x2x256xf32>
    %94 = vector.shape_cast %93 : vector<1x2x256xf32> to vector<2x256xf32>
    %cst_24 = arith.constant dense<0.000000e+00> : vector<2x256xf32>
    %95 = tpu.matmul %70, %0, %cst_24 {dimension_numbers = #tpu.dot_dimension_numbers<[1], [0], [0], [1], [0, 0, 1, 1], [], []>} : vector<2x64xf32>, vector<64x256xf32>, vector<2x256xf32> -> vector<2x256xf32>
    %96 = arith.addf %94, %95 : vector<2x256xf32>
    %97 = vector.extract_strided_slice %96 {offsets = [0, 0], sizes = [2, 192], strides = [1, 1]} : vector<2x256xf32> to vector<2x192xf32>
    %98 = arith.negf %97 : vector<2x192xf32>
    %99 = math.exp %98 : vector<2x192xf32>
    %cst_25 = arith.constant 1.000000e+00 : f32
    %100 = vector.broadcast %cst_25 : f32 to vector<2x192xf32>
    %101 = arith.addf %100, %99 : vector<2x192xf32>
    %102 = arith.divf %100, %101 : vector<2x192xf32>
    %103 = vector.extract_strided_slice %96 {offsets = [0, 192], sizes = [2, 64], strides = [1, 1]} : vector<2x256xf32> to vector<2x64xf32>
    %104 = math.tanh %103 : vector<2x64xf32>
    %105 = vector.extract_strided_slice %102 {offsets = [0, 0], sizes = [2, 64], strides = [1, 1]} : vector<2x192xf32> to vector<2x64xf32>
    %106 = vector.extract_strided_slice %102 {offsets = [0, 64], sizes = [2, 64], strides = [1, 1]} : vector<2x192xf32> to vector<2x64xf32>
    %107 = vector.extract_strided_slice %102 {offsets = [0, 128], sizes = [2, 64], strides = [1, 1]} : vector<2x192xf32> to vector<2x64xf32>
    %108 = arith.mulf %106, %68 : vector<2x64xf32>
    %109 = arith.mulf %105, %104 : vector<2x64xf32>
    %110 = arith.addf %108, %109 : vector<2x64xf32>
    %111 = math.tanh %110 : vector<2x64xf32>
    %112 = arith.mulf %107, %111 : vector<2x64xf32>
    %cst_26 = arith.constant dense<0.000000e+00> : vector<2x256xf32>
    %113 = tpu.matmul %112, %1, %cst_26 {dimension_numbers = #tpu.dot_dimension_numbers<[1], [0], [0], [1], [0, 0, 1, 1], [], []>} : vector<2x64xf32>, vector<64x256xf32>, vector<2x256xf32> -> vector<2x256xf32>
    %114 = arith.addf %91, %113 : vector<2x256xf32>
    %115 = vector.extract_strided_slice %114 {offsets = [0, 0], sizes = [2, 192], strides = [1, 1]} : vector<2x256xf32> to vector<2x192xf32>
    %116 = arith.negf %115 : vector<2x192xf32>
    %117 = math.exp %116 : vector<2x192xf32>
    %cst_27 = arith.constant 1.000000e+00 : f32
    %118 = vector.broadcast %cst_27 : f32 to vector<2x192xf32>
    %119 = arith.addf %118, %117 : vector<2x192xf32>
    %120 = arith.divf %118, %119 : vector<2x192xf32>
    %121 = vector.extract_strided_slice %114 {offsets = [0, 192], sizes = [2, 64], strides = [1, 1]} : vector<2x256xf32> to vector<2x64xf32>
    %122 = math.tanh %121 : vector<2x64xf32>
    %123 = vector.extract_strided_slice %120 {offsets = [0, 0], sizes = [2, 64], strides = [1, 1]} : vector<2x192xf32> to vector<2x64xf32>
    %124 = vector.extract_strided_slice %120 {offsets = [0, 64], sizes = [2, 64], strides = [1, 1]} : vector<2x192xf32> to vector<2x64xf32>
    %125 = vector.extract_strided_slice %120 {offsets = [0, 128], sizes = [2, 64], strides = [1, 1]} : vector<2x192xf32> to vector<2x64xf32>
    %126 = arith.mulf %124, %86 : vector<2x64xf32>
    %127 = arith.mulf %123, %122 : vector<2x64xf32>
    %128 = arith.addf %126, %127 : vector<2x64xf32>
    %129 = math.tanh %128 : vector<2x64xf32>
    %130 = arith.mulf %125, %129 : vector<2x64xf32>
    %c3_i32 = arith.constant 3 : i32
    %cst_28 = arith.constant dense<0.000000e+00> : vector<2x256xf32>
    %131 = tpu.matmul %130, %2, %cst_28 {dimension_numbers = #tpu.dot_dimension_numbers<[1], [0], [0], [1], [0, 0, 1, 1], [], []>} : vector<2x64xf32>, vector<64x256xf32>, vector<2x256xf32> -> vector<2x256xf32>
    %132 = vector.broadcast %3 : vector<1x256xf32> to vector<2x256xf32>
    %133 = arith.addf %131, %132 : vector<2x256xf32>
    %134 = arith.index_cast %c3_i32 : i32 to index
    %c0_29 = arith.constant 0 : index
    %c0_30 = arith.constant 0 : index
    %135 = vector.load %arg1[%134, %c0_29, %c0_30] : memref<8x2x256xf32, #tpu.memory_space<vmem>>, vector<1x2x256xf32>
    %136 = vector.shape_cast %135 : vector<1x2x256xf32> to vector<2x256xf32>
    %cst_31 = arith.constant dense<0.000000e+00> : vector<2x256xf32>
    %137 = tpu.matmul %112, %0, %cst_31 {dimension_numbers = #tpu.dot_dimension_numbers<[1], [0], [0], [1], [0, 0, 1, 1], [], []>} : vector<2x64xf32>, vector<64x256xf32>, vector<2x256xf32> -> vector<2x256xf32>
    %138 = arith.addf %136, %137 : vector<2x256xf32>
    %139 = vector.extract_strided_slice %138 {offsets = [0, 0], sizes = [2, 192], strides = [1, 1]} : vector<2x256xf32> to vector<2x192xf32>
    %140 = arith.negf %139 : vector<2x192xf32>
    %141 = math.exp %140 : vector<2x192xf32>
    %cst_32 = arith.constant 1.000000e+00 : f32
    %142 = vector.broadcast %cst_32 : f32 to vector<2x192xf32>
    %143 = arith.addf %142, %141 : vector<2x192xf32>
    %144 = arith.divf %142, %143 : vector<2x192xf32>
    %145 = vector.extract_strided_slice %138 {offsets = [0, 192], sizes = [2, 64], strides = [1, 1]} : vector<2x256xf32> to vector<2x64xf32>
    %146 = math.tanh %145 : vector<2x64xf32>
    %147 = vector.extract_strided_slice %144 {offsets = [0, 0], sizes = [2, 64], strides = [1, 1]} : vector<2x192xf32> to vector<2x64xf32>
    %148 = vector.extract_strided_slice %144 {offsets = [0, 64], sizes = [2, 64], strides = [1, 1]} : vector<2x192xf32> to vector<2x64xf32>
    %149 = vector.extract_strided_slice %144 {offsets = [0, 128], sizes = [2, 64], strides = [1, 1]} : vector<2x192xf32> to vector<2x64xf32>
    %150 = arith.mulf %148, %110 : vector<2x64xf32>
    %151 = arith.mulf %147, %146 : vector<2x64xf32>
    %152 = arith.addf %150, %151 : vector<2x64xf32>
    %153 = math.tanh %152 : vector<2x64xf32>
    %154 = arith.mulf %149, %153 : vector<2x64xf32>
    %cst_33 = arith.constant dense<0.000000e+00> : vector<2x256xf32>
    %155 = tpu.matmul %154, %1, %cst_33 {dimension_numbers = #tpu.dot_dimension_numbers<[1], [0], [0], [1], [0, 0, 1, 1], [], []>} : vector<2x64xf32>, vector<64x256xf32>, vector<2x256xf32> -> vector<2x256xf32>
    %156 = arith.addf %133, %155 : vector<2x256xf32>
    %157 = vector.extract_strided_slice %156 {offsets = [0, 0], sizes = [2, 192], strides = [1, 1]} : vector<2x256xf32> to vector<2x192xf32>
    %158 = arith.negf %157 : vector<2x192xf32>
    %159 = math.exp %158 : vector<2x192xf32>
    %cst_34 = arith.constant 1.000000e+00 : f32
    %160 = vector.broadcast %cst_34 : f32 to vector<2x192xf32>
    %161 = arith.addf %160, %159 : vector<2x192xf32>
    %162 = arith.divf %160, %161 : vector<2x192xf32>
    %163 = vector.extract_strided_slice %156 {offsets = [0, 192], sizes = [2, 64], strides = [1, 1]} : vector<2x256xf32> to vector<2x64xf32>
    %164 = math.tanh %163 : vector<2x64xf32>
    %165 = vector.extract_strided_slice %162 {offsets = [0, 0], sizes = [2, 64], strides = [1, 1]} : vector<2x192xf32> to vector<2x64xf32>
    %166 = vector.extract_strided_slice %162 {offsets = [0, 64], sizes = [2, 64], strides = [1, 1]} : vector<2x192xf32> to vector<2x64xf32>
    %167 = vector.extract_strided_slice %162 {offsets = [0, 128], sizes = [2, 64], strides = [1, 1]} : vector<2x192xf32> to vector<2x64xf32>
    %168 = arith.mulf %166, %128 : vector<2x64xf32>
    %169 = arith.mulf %165, %164 : vector<2x64xf32>
    %170 = arith.addf %168, %169 : vector<2x64xf32>
    %171 = math.tanh %170 : vector<2x64xf32>
    %172 = arith.mulf %167, %171 : vector<2x64xf32>
    %c4_i32 = arith.constant 4 : i32
    %cst_35 = arith.constant dense<0.000000e+00> : vector<2x256xf32>
    %173 = tpu.matmul %172, %2, %cst_35 {dimension_numbers = #tpu.dot_dimension_numbers<[1], [0], [0], [1], [0, 0, 1, 1], [], []>} : vector<2x64xf32>, vector<64x256xf32>, vector<2x256xf32> -> vector<2x256xf32>
    %174 = vector.broadcast %3 : vector<1x256xf32> to vector<2x256xf32>
    %175 = arith.addf %173, %174 : vector<2x256xf32>
    %176 = arith.index_cast %c4_i32 : i32 to index
    %c0_36 = arith.constant 0 : index
    %c0_37 = arith.constant 0 : index
    %177 = vector.load %arg1[%176, %c0_36, %c0_37] : memref<8x2x256xf32, #tpu.memory_space<vmem>>, vector<1x2x256xf32>
    %178 = vector.shape_cast %177 : vector<1x2x256xf32> to vector<2x256xf32>
    %cst_38 = arith.constant dense<0.000000e+00> : vector<2x256xf32>
    %179 = tpu.matmul %154, %0, %cst_38 {dimension_numbers = #tpu.dot_dimension_numbers<[1], [0], [0], [1], [0, 0, 1, 1], [], []>} : vector<2x64xf32>, vector<64x256xf32>, vector<2x256xf32> -> vector<2x256xf32>
    %180 = arith.addf %178, %179 : vector<2x256xf32>
    %181 = vector.extract_strided_slice %180 {offsets = [0, 0], sizes = [2, 192], strides = [1, 1]} : vector<2x256xf32> to vector<2x192xf32>
    %182 = arith.negf %181 : vector<2x192xf32>
    %183 = math.exp %182 : vector<2x192xf32>
    %cst_39 = arith.constant 1.000000e+00 : f32
    %184 = vector.broadcast %cst_39 : f32 to vector<2x192xf32>
    %185 = arith.addf %184, %183 : vector<2x192xf32>
    %186 = arith.divf %184, %185 : vector<2x192xf32>
    %187 = vector.extract_strided_slice %180 {offsets = [0, 192], sizes = [2, 64], strides = [1, 1]} : vector<2x256xf32> to vector<2x64xf32>
    %188 = math.tanh %187 : vector<2x64xf32>
    %189 = vector.extract_strided_slice %186 {offsets = [0, 0], sizes = [2, 64], strides = [1, 1]} : vector<2x192xf32> to vector<2x64xf32>
    %190 = vector.extract_strided_slice %186 {offsets = [0, 64], sizes = [2, 64], strides = [1, 1]} : vector<2x192xf32> to vector<2x64xf32>
    %191 = vector.extract_strided_slice %186 {offsets = [0, 128], sizes = [2, 64], strides = [1, 1]} : vector<2x192xf32> to vector<2x64xf32>
    %192 = arith.mulf %190, %152 : vector<2x64xf32>
    %193 = arith.mulf %189, %188 : vector<2x64xf32>
    %194 = arith.addf %192, %193 : vector<2x64xf32>
    %195 = math.tanh %194 : vector<2x64xf32>
    %196 = arith.mulf %191, %195 : vector<2x64xf32>
    %cst_40 = arith.constant dense<0.000000e+00> : vector<2x256xf32>
    %197 = tpu.matmul %196, %1, %cst_40 {dimension_numbers = #tpu.dot_dimension_numbers<[1], [0], [0], [1], [0, 0, 1, 1], [], []>} : vector<2x64xf32>, vector<64x256xf32>, vector<2x256xf32> -> vector<2x256xf32>
    %198 = arith.addf %175, %197 : vector<2x256xf32>
    %199 = vector.extract_strided_slice %198 {offsets = [0, 0], sizes = [2, 192], strides = [1, 1]} : vector<2x256xf32> to vector<2x192xf32>
    %200 = arith.negf %199 : vector<2x192xf32>
    %201 = math.exp %200 : vector<2x192xf32>
    %cst_41 = arith.constant 1.000000e+00 : f32
    %202 = vector.broadcast %cst_41 : f32 to vector<2x192xf32>
    %203 = arith.addf %202, %201 : vector<2x192xf32>
    %204 = arith.divf %202, %203 : vector<2x192xf32>
    %205 = vector.extract_strided_slice %198 {offsets = [0, 192], sizes = [2, 64], strides = [1, 1]} : vector<2x256xf32> to vector<2x64xf32>
    %206 = math.tanh %205 : vector<2x64xf32>
    %207 = vector.extract_strided_slice %204 {offsets = [0, 0], sizes = [2, 64], strides = [1, 1]} : vector<2x192xf32> to vector<2x64xf32>
    %208 = vector.extract_strided_slice %204 {offsets = [0, 64], sizes = [2, 64], strides = [1, 1]} : vector<2x192xf32> to vector<2x64xf32>
    %209 = vector.extract_strided_slice %204 {offsets = [0, 128], sizes = [2, 64], strides = [1, 1]} : vector<2x192xf32> to vector<2x64xf32>
    %210 = arith.mulf %208, %170 : vector<2x64xf32>
    %211 = arith.mulf %207, %206 : vector<2x64xf32>
    %212 = arith.addf %210, %211 : vector<2x64xf32>
    %213 = math.tanh %212 : vector<2x64xf32>
    %214 = arith.mulf %209, %213 : vector<2x64xf32>
    %c5_i32 = arith.constant 5 : i32
    %cst_42 = arith.constant dense<0.000000e+00> : vector<2x256xf32>
    %215 = tpu.matmul %214, %2, %cst_42 {dimension_numbers = #tpu.dot_dimension_numbers<[1], [0], [0], [1], [0, 0, 1, 1], [], []>} : vector<2x64xf32>, vector<64x256xf32>, vector<2x256xf32> -> vector<2x256xf32>
    %216 = vector.broadcast %3 : vector<1x256xf32> to vector<2x256xf32>
    %217 = arith.addf %215, %216 : vector<2x256xf32>
    %218 = arith.index_cast %c5_i32 : i32 to index
    %c0_43 = arith.constant 0 : index
    %c0_44 = arith.constant 0 : index
    %219 = vector.load %arg1[%218, %c0_43, %c0_44] : memref<8x2x256xf32, #tpu.memory_space<vmem>>, vector<1x2x256xf32>
    %220 = vector.shape_cast %219 : vector<1x2x256xf32> to vector<2x256xf32>
    %cst_45 = arith.constant dense<0.000000e+00> : vector<2x256xf32>
    %221 = tpu.matmul %196, %0, %cst_45 {dimension_numbers = #tpu.dot_dimension_numbers<[1], [0], [0], [1], [0, 0, 1, 1], [], []>} : vector<2x64xf32>, vector<64x256xf32>, vector<2x256xf32> -> vector<2x256xf32>
    %222 = arith.addf %220, %221 : vector<2x256xf32>
    %223 = vector.extract_strided_slice %222 {offsets = [0, 0], sizes = [2, 192], strides = [1, 1]} : vector<2x256xf32> to vector<2x192xf32>
    %224 = arith.negf %223 : vector<2x192xf32>
    %225 = math.exp %224 : vector<2x192xf32>
    %cst_46 = arith.constant 1.000000e+00 : f32
    %226 = vector.broadcast %cst_46 : f32 to vector<2x192xf32>
    %227 = arith.addf %226, %225 : vector<2x192xf32>
    %228 = arith.divf %226, %227 : vector<2x192xf32>
    %229 = vector.extract_strided_slice %222 {offsets = [0, 192], sizes = [2, 64], strides = [1, 1]} : vector<2x256xf32> to vector<2x64xf32>
    %230 = math.tanh %229 : vector<2x64xf32>
    %231 = vector.extract_strided_slice %228 {offsets = [0, 0], sizes = [2, 64], strides = [1, 1]} : vector<2x192xf32> to vector<2x64xf32>
    %232 = vector.extract_strided_slice %228 {offsets = [0, 64], sizes = [2, 64], strides = [1, 1]} : vector<2x192xf32> to vector<2x64xf32>
    %233 = vector.extract_strided_slice %228 {offsets = [0, 128], sizes = [2, 64], strides = [1, 1]} : vector<2x192xf32> to vector<2x64xf32>
    %234 = arith.mulf %232, %194 : vector<2x64xf32>
    %235 = arith.mulf %231, %230 : vector<2x64xf32>
    %236 = arith.addf %234, %235 : vector<2x64xf32>
    %237 = math.tanh %236 : vector<2x64xf32>
    %238 = arith.mulf %233, %237 : vector<2x64xf32>
    %cst_47 = arith.constant dense<0.000000e+00> : vector<2x256xf32>
    %239 = tpu.matmul %238, %1, %cst_47 {dimension_numbers = #tpu.dot_dimension_numbers<[1], [0], [0], [1], [0, 0, 1, 1], [], []>} : vector<2x64xf32>, vector<64x256xf32>, vector<2x256xf32> -> vector<2x256xf32>
    %240 = arith.addf %217, %239 : vector<2x256xf32>
    %241 = vector.extract_strided_slice %240 {offsets = [0, 0], sizes = [2, 192], strides = [1, 1]} : vector<2x256xf32> to vector<2x192xf32>
    %242 = arith.negf %241 : vector<2x192xf32>
    %243 = math.exp %242 : vector<2x192xf32>
    %cst_48 = arith.constant 1.000000e+00 : f32
    %244 = vector.broadcast %cst_48 : f32 to vector<2x192xf32>
    %245 = arith.addf %244, %243 : vector<2x192xf32>
    %246 = arith.divf %244, %245 : vector<2x192xf32>
    %247 = vector.extract_strided_slice %240 {offsets = [0, 192], sizes = [2, 64], strides = [1, 1]} : vector<2x256xf32> to vector<2x64xf32>
    %248 = math.tanh %247 : vector<2x64xf32>
    %249 = vector.extract_strided_slice %246 {offsets = [0, 0], sizes = [2, 64], strides = [1, 1]} : vector<2x192xf32> to vector<2x64xf32>
    %250 = vector.extract_strided_slice %246 {offsets = [0, 64], sizes = [2, 64], strides = [1, 1]} : vector<2x192xf32> to vector<2x64xf32>
    %251 = vector.extract_strided_slice %246 {offsets = [0, 128], sizes = [2, 64], strides = [1, 1]} : vector<2x192xf32> to vector<2x64xf32>
    %252 = arith.mulf %250, %212 : vector<2x64xf32>
    %253 = arith.mulf %249, %248 : vector<2x64xf32>
    %254 = arith.addf %252, %253 : vector<2x64xf32>
    %255 = math.tanh %254 : vector<2x64xf32>
    %256 = arith.mulf %251, %255 : vector<2x64xf32>
    %c6_i32 = arith.constant 6 : i32
    %cst_49 = arith.constant dense<0.000000e+00> : vector<2x256xf32>
    %257 = tpu.matmul %256, %2, %cst_49 {dimension_numbers = #tpu.dot_dimension_numbers<[1], [0], [0], [1], [0, 0, 1, 1], [], []>} : vector<2x64xf32>, vector<64x256xf32>, vector<2x256xf32> -> vector<2x256xf32>
    %258 = vector.broadcast %3 : vector<1x256xf32> to vector<2x256xf32>
    %259 = arith.addf %257, %258 : vector<2x256xf32>
    %260 = arith.index_cast %c6_i32 : i32 to index
    %c0_50 = arith.constant 0 : index
    %c0_51 = arith.constant 0 : index
    %261 = vector.load %arg1[%260, %c0_50, %c0_51] : memref<8x2x256xf32, #tpu.memory_space<vmem>>, vector<1x2x256xf32>
    %262 = vector.shape_cast %261 : vector<1x2x256xf32> to vector<2x256xf32>
    %cst_52 = arith.constant dense<0.000000e+00> : vector<2x256xf32>
    %263 = tpu.matmul %238, %0, %cst_52 {dimension_numbers = #tpu.dot_dimension_numbers<[1], [0], [0], [1], [0, 0, 1, 1], [], []>} : vector<2x64xf32>, vector<64x256xf32>, vector<2x256xf32> -> vector<2x256xf32>
    %264 = arith.addf %262, %263 : vector<2x256xf32>
    %265 = vector.extract_strided_slice %264 {offsets = [0, 0], sizes = [2, 192], strides = [1, 1]} : vector<2x256xf32> to vector<2x192xf32>
    %266 = arith.negf %265 : vector<2x192xf32>
    %267 = math.exp %266 : vector<2x192xf32>
    %cst_53 = arith.constant 1.000000e+00 : f32
    %268 = vector.broadcast %cst_53 : f32 to vector<2x192xf32>
    %269 = arith.addf %268, %267 : vector<2x192xf32>
    %270 = arith.divf %268, %269 : vector<2x192xf32>
    %271 = vector.extract_strided_slice %264 {offsets = [0, 192], sizes = [2, 64], strides = [1, 1]} : vector<2x256xf32> to vector<2x64xf32>
    %272 = math.tanh %271 : vector<2x64xf32>
    %273 = vector.extract_strided_slice %270 {offsets = [0, 0], sizes = [2, 64], strides = [1, 1]} : vector<2x192xf32> to vector<2x64xf32>
    %274 = vector.extract_strided_slice %270 {offsets = [0, 64], sizes = [2, 64], strides = [1, 1]} : vector<2x192xf32> to vector<2x64xf32>
    %275 = vector.extract_strided_slice %270 {offsets = [0, 128], sizes = [2, 64], strides = [1, 1]} : vector<2x192xf32> to vector<2x64xf32>
    %276 = arith.mulf %274, %236 : vector<2x64xf32>
    %277 = arith.mulf %273, %272 : vector<2x64xf32>
    %278 = arith.addf %276, %277 : vector<2x64xf32>
    %279 = math.tanh %278 : vector<2x64xf32>
    %280 = arith.mulf %275, %279 : vector<2x64xf32>
    %cst_54 = arith.constant dense<0.000000e+00> : vector<2x256xf32>
    %281 = tpu.matmul %280, %1, %cst_54 {dimension_numbers = #tpu.dot_dimension_numbers<[1], [0], [0], [1], [0, 0, 1, 1], [], []>} : vector<2x64xf32>, vector<64x256xf32>, vector<2x256xf32> -> vector<2x256xf32>
    %282 = arith.addf %259, %281 : vector<2x256xf32>
    %283 = vector.extract_strided_slice %282 {offsets = [0, 0], sizes = [2, 192], strides = [1, 1]} : vector<2x256xf32> to vector<2x192xf32>
    %284 = arith.negf %283 : vector<2x192xf32>
    %285 = math.exp %284 : vector<2x192xf32>
    %cst_55 = arith.constant 1.000000e+00 : f32
    %286 = vector.broadcast %cst_55 : f32 to vector<2x192xf32>
    %287 = arith.addf %286, %285 : vector<2x192xf32>
    %288 = arith.divf %286, %287 : vector<2x192xf32>
    %289 = vector.extract_strided_slice %282 {offsets = [0, 192], sizes = [2, 64], strides = [1, 1]} : vector<2x256xf32> to vector<2x64xf32>
    %290 = math.tanh %289 : vector<2x64xf32>
    %291 = vector.extract_strided_slice %288 {offsets = [0, 0], sizes = [2, 64], strides = [1, 1]} : vector<2x192xf32> to vector<2x64xf32>
    %292 = vector.extract_strided_slice %288 {offsets = [0, 64], sizes = [2, 64], strides = [1, 1]} : vector<2x192xf32> to vector<2x64xf32>
    %293 = vector.extract_strided_slice %288 {offsets = [0, 128], sizes = [2, 64], strides = [1, 1]} : vector<2x192xf32> to vector<2x64xf32>
    %294 = arith.mulf %292, %254 : vector<2x64xf32>
    %295 = arith.mulf %291, %290 : vector<2x64xf32>
    %296 = arith.addf %294, %295 : vector<2x64xf32>
    %297 = math.tanh %296 : vector<2x64xf32>
    %298 = arith.mulf %293, %297 : vector<2x64xf32>
    %c7_i32 = arith.constant 7 : i32
    %cst_56 = arith.constant dense<0.000000e+00> : vector<2x256xf32>
    %299 = tpu.matmul %298, %2, %cst_56 {dimension_numbers = #tpu.dot_dimension_numbers<[1], [0], [0], [1], [0, 0, 1, 1], [], []>} : vector<2x64xf32>, vector<64x256xf32>, vector<2x256xf32> -> vector<2x256xf32>
    %300 = vector.broadcast %3 : vector<1x256xf32> to vector<2x256xf32>
    %301 = arith.addf %299, %300 : vector<2x256xf32>
    %302 = arith.index_cast %c7_i32 : i32 to index
    %c0_57 = arith.constant 0 : index
    %c0_58 = arith.constant 0 : index
    %303 = vector.load %arg1[%302, %c0_57, %c0_58] : memref<8x2x256xf32, #tpu.memory_space<vmem>>, vector<1x2x256xf32>
    %304 = vector.shape_cast %303 : vector<1x2x256xf32> to vector<2x256xf32>
    %cst_59 = arith.constant dense<0.000000e+00> : vector<2x256xf32>
    %305 = tpu.matmul %280, %0, %cst_59 {dimension_numbers = #tpu.dot_dimension_numbers<[1], [0], [0], [1], [0, 0, 1, 1], [], []>} : vector<2x64xf32>, vector<64x256xf32>, vector<2x256xf32> -> vector<2x256xf32>
    %306 = arith.addf %304, %305 : vector<2x256xf32>
    %307 = vector.extract_strided_slice %306 {offsets = [0, 0], sizes = [2, 192], strides = [1, 1]} : vector<2x256xf32> to vector<2x192xf32>
    %308 = arith.negf %307 : vector<2x192xf32>
    %309 = math.exp %308 : vector<2x192xf32>
    %cst_60 = arith.constant 1.000000e+00 : f32
    %310 = vector.broadcast %cst_60 : f32 to vector<2x192xf32>
    %311 = arith.addf %310, %309 : vector<2x192xf32>
    %312 = arith.divf %310, %311 : vector<2x192xf32>
    %313 = vector.extract_strided_slice %306 {offsets = [0, 192], sizes = [2, 64], strides = [1, 1]} : vector<2x256xf32> to vector<2x64xf32>
    %314 = math.tanh %313 : vector<2x64xf32>
    %315 = vector.extract_strided_slice %312 {offsets = [0, 0], sizes = [2, 64], strides = [1, 1]} : vector<2x192xf32> to vector<2x64xf32>
    %316 = vector.extract_strided_slice %312 {offsets = [0, 64], sizes = [2, 64], strides = [1, 1]} : vector<2x192xf32> to vector<2x64xf32>
    %317 = vector.extract_strided_slice %312 {offsets = [0, 128], sizes = [2, 64], strides = [1, 1]} : vector<2x192xf32> to vector<2x64xf32>
    %318 = arith.mulf %316, %278 : vector<2x64xf32>
    %319 = arith.mulf %315, %314 : vector<2x64xf32>
    %320 = arith.addf %318, %319 : vector<2x64xf32>
    %321 = math.tanh %320 : vector<2x64xf32>
    %322 = arith.mulf %317, %321 : vector<2x64xf32>
    %cst_61 = arith.constant dense<0.000000e+00> : vector<2x256xf32>
    %323 = tpu.matmul %322, %1, %cst_61 {dimension_numbers = #tpu.dot_dimension_numbers<[1], [0], [0], [1], [0, 0, 1, 1], [], []>} : vector<2x64xf32>, vector<64x256xf32>, vector<2x256xf32> -> vector<2x256xf32>
    %324 = arith.addf %301, %323 : vector<2x256xf32>
    %325 = vector.extract_strided_slice %324 {offsets = [0, 0], sizes = [2, 192], strides = [1, 1]} : vector<2x256xf32> to vector<2x192xf32>
    %326 = arith.negf %325 : vector<2x192xf32>
    %327 = math.exp %326 : vector<2x192xf32>
    %cst_62 = arith.constant 1.000000e+00 : f32
    %328 = vector.broadcast %cst_62 : f32 to vector<2x192xf32>
    %329 = arith.addf %328, %327 : vector<2x192xf32>
    %330 = arith.divf %328, %329 : vector<2x192xf32>
    %331 = vector.extract_strided_slice %324 {offsets = [0, 192], sizes = [2, 64], strides = [1, 1]} : vector<2x256xf32> to vector<2x64xf32>
    %332 = math.tanh %331 : vector<2x64xf32>
    %333 = vector.extract_strided_slice %330 {offsets = [0, 0], sizes = [2, 64], strides = [1, 1]} : vector<2x192xf32> to vector<2x64xf32>
    %334 = vector.extract_strided_slice %330 {offsets = [0, 64], sizes = [2, 64], strides = [1, 1]} : vector<2x192xf32> to vector<2x64xf32>
    %335 = vector.extract_strided_slice %330 {offsets = [0, 128], sizes = [2, 64], strides = [1, 1]} : vector<2x192xf32> to vector<2x64xf32>
    %336 = arith.mulf %334, %296 : vector<2x64xf32>
    %337 = arith.mulf %333, %332 : vector<2x64xf32>
    %338 = arith.addf %336, %337 : vector<2x64xf32>
    %339 = math.tanh %338 : vector<2x64xf32>
    %340 = arith.mulf %335, %339 : vector<2x64xf32>
    %c8_i32 = arith.constant 8 : i32
    %c0_63 = arith.constant 0 : index
    %c0_64 = arith.constant 0 : index
    %341 = vector.load %arg6[%c0_63, %c0_64] : memref<64x128xf32, #tpu.memory_space<vmem>>, vector<64x128xf32>
    %cst_65 = arith.constant dense<0.000000e+00> : vector<2x128xf32>
    %342 = tpu.matmul %340, %341, %cst_65 {dimension_numbers = #tpu.dot_dimension_numbers<[1], [0], [0], [1], [0, 0, 1, 1], [], []>} : vector<2x64xf32>, vector<64x128xf32>, vector<2x128xf32> -> vector<2x128xf32>
    %c0_66 = arith.constant 0 : index
    %c0_67 = arith.constant 0 : index
    %343 = vector.load %arg7[%c0_66, %c0_67] : memref<1x128xf32, #tpu.memory_space<vmem>>, vector<1x128xf32>
    %344 = vector.broadcast %343 : vector<1x128xf32> to vector<2x128xf32>
    %345 = arith.addf %342, %344 : vector<2x128xf32>
    %c0_68 = arith.constant 0 : index
    %c0_69 = arith.constant 0 : index
    %346 = vector.load %arg8[%c0_68, %c0_69] : memref<2x128xf32, #tpu.memory_space<vmem>>, vector<2x128xf32>
    tpu.vector_store %arg8[%c0_68, %c0_69], %345 {strides = array<i32>} : memref<2x128xf32, #tpu.memory_space<vmem>>, vector<2x128xf32>,
    return
  }
  func.func @transform_0(%arg0: i32) -> (i32, i32, i32) {
    %c0_i32 = arith.constant 0 : i32
    %c0_i32_0 = arith.constant 0 : i32
    %c0_i32_1 = arith.constant 0 : i32
    return %c0_i32, %arg0, %c0_i32_0 : i32, i32, i32
  }
  func.func @transform_1(%arg0: i32) -> (i32, i32) {
    %c0_i32 = arith.constant 0 : i32
    %c0_i32_0 = arith.constant 0 : i32
    %c0_i32_1 = arith.constant 0 : i32
    return %c0_i32, %c0_i32_0 : i32, i32
  }
  func.func @transform_2(%arg0: i32) -> (i32, i32) {
    %c0_i32 = arith.constant 0 : i32
    %c0_i32_0 = arith.constant 0 : i32
    %c0_i32_1 = arith.constant 0 : i32
    return %c0_i32, %c0_i32_0 : i32, i32
  }
  func.func @transform_3(%arg0: i32) -> (i32, i32) {
    %c0_i32 = arith.constant 0 : i32
    %c0_i32_0 = arith.constant 0 : i32
    %c0_i32_1 = arith.constant 0 : i32
    return %c0_i32, %c0_i32_0 : i32, i32
  }
  func.func @transform_4(%arg0: i32) -> (i32, i32) {
    %c0_i32 = arith.constant 0 : i32
    %c0_i32_0 = arith.constant 0 : i32
    %c0_i32_1 = arith.constant 0 : i32
    return %c0_i32, %c0_i32_0 : i32, i32
  }
  func.func @transform_5(%arg0: i32) -> (i32, i32) {
    %c0_i32 = arith.constant 0 : i32
    %c0_i32_0 = arith.constant 0 : i32
    %c0_i32_1 = arith.constant 0 : i32
    return %c0_i32, %c0_i32_0 : i32, i32
  }
  func.func @transform_6(%arg0: i32) -> (i32, i32) {
    %c0_i32 = arith.constant 0 : i32
    %c0_i32_0 = arith.constant 0 : i32
    %c0_i32_1 = arith.constant 0 : i32
    return %c0_i32, %c0_i32_0 : i32, i32
  }
  func.func @transform_7(%arg0: i32) -> (i32, i32) {
    %c0_i32 = arith.constant 0 : i32
    %c0_i32_0 = arith.constant 0 : i32
    return %arg0, %c0_i32 : i32, i32
  }
}

</mosaic_0001>

<bundles_post_ra>
// kernel: lstm_model_forward.1
= control target key start
LH: loop header
LB: loop body
LE: loop exit
PB: predicated region body
PF: predicated region fallthrough
CT: control target
= control target key end

     0   :  { %12 = vsyncpa [#allocation3], 0  ;;  %s3895_s0 = inlined_call_operand.vmem [shape: f32[8,2,256], index: 0, kind: input, shape index: {}]   ;;  %s3896_s1 = inlined_call_operand.hbm [shape: f32[64,256], index: 1, kind: input, shape index: {}]   ;;  %s3897_s2 = inlined_call_operand.hbm [shape: f32[64,256], index: 2, kind: input, shape index: {}]   ;;  %s3898_s3 = inlined_call_operand.hbm [shape: f32[64,256], index: 3, kind: input, shape index: {}]   ;;  %s3899_s4 = inlined_call_operand.vmem [shape: f32[1,256], index: 4, kind: input, shape index: {}]   ;;  %s3900_s5 = inlined_call_operand.vmem [shape: f32[64,128], index: 5, kind: input, shape index: {}]   ;;  %s3901_s6 = inlined_call_operand.hbm [shape: f32[1,128], index: 6, kind: input, shape index: {}]   ;;  %s3902_s7 = inlined_call_operand.hbm [shape: f32[2,128], index: 7, kind: output, shape index: {}]  }
   0x1   :  { %13 = vsyncpa [#allocation6], 0 }
   0x2   :  { %14 = vsyncpa [#allocation9], 0 }
   0x3   :  { %15 = vsyncpa [#allocation4], 0  ;;  %s3000_s24 = smov [#allocation5]   ;;  %s3001_s26 = smov [#allocation2]  }
   0x4   :  { %s35_s25 = sshll.u32 %s3000_s24, 4  ;;  %s23_s27 = sshll.u32 %s3001_s26, 4  ;;  %s36_s25 = int_to_ptr.vmem [resolvable:$true] %s35_s25  ;;  %s24_s27 = int_to_ptr.vmem [resolvable:$true] %s23_s27 }
   0x5   :  { %s2900_s28 = scalar_lea.vmem %s36_s25, 2048  ;;  %p2905_p1 = scmp.lt.s32.totalorder %s36_s25, %s36_s25 }
   0x6   :  { %p2901_p0 = scmp.ne.s32.totalorder %s36_s25, %s2900_s28  ;;  %p2906_p2 = scmp.lt.s32.totalorder %s2900_s28, %s2900_s28 }
   0x8   :  { %p2907_p3 = por %p2906_p2, %p2905_p1 }
   0xa   :  { %p2908_p4 = pnand %p2907_p3, %p2901_p0 }
   0xc   :  { %2911 = shalt.err (!%p2908_p4)
}
   0xd   :  { %s3002_s29 = smov 256   ;;  %s3003_s30 = smov 16  }
   0xe   :  { %41 = dma.hbm_to_vmem [thread:$0]  %s3897_s2, 2048, %s36_s25, [#allocation6], %s3002_s29, %s3002_s29, %s3003_s30  }
   0xf   :  { %s2920_s10 = scalar_lea.vmem %s24_s27, 2048  ;;  %p2925_p6 = scmp.lt.s32.totalorder %s24_s27, %s24_s27 }
  0x10   :  { %p2921_p5 = scmp.ne.s32.totalorder %s24_s27, %s2920_s10  ;;  %p2926_p7 = scmp.lt.s32.totalorder %s2920_s10, %s2920_s10 }
  0x12   :  { %p2927_p8 = por %p2926_p7, %p2925_p6 }
  0x14   :  { %p2928_p9 = pnand %p2927_p8, %p2921_p5 }
  0x16   :  { %2931 = shalt.err (!%p2928_p9)
}
  0x17   :  { %29 = dma.hbm_to_vmem [thread:$0]  %s3896_s1, 2048, %s24_s27, [#allocation3], %s3002_s29, %s3002_s29, %s3003_s30  }
  0x18   :  { %s3004_s13 = smov [#allocation7]   ;;  %s3005_s15 = smov [#allocation8]  }
  0x19   :  { %s47_s14 = sshll.u32 %s3004_s13, 4  ;;  %s64_s16 = sshll.u32 %s3005_s15, 4  ;;  %s48_s14 = int_to_ptr.vmem [resolvable:$true] %s47_s14  ;;  %s65_s16 = int_to_ptr.vmem [resolvable:$true] %s64_s16 }
  0x1a   :  { %s2940_s17 = scalar_lea.vmem %s48_s14, 2048  ;;  %p2945_p11 = scmp.lt.s32.totalorder %s48_s14, %s48_s14 }
  0x1b   :  { %p2941_p10 = scmp.ne.s32.totalorder %s48_s14, %s2940_s17  ;;  %p2946_p12 = scmp.lt.s32.totalorder %s2940_s17, %s2940_s17 }
  0x1d   :  { %p2947_p13 = por %p2946_p12, %p2945_p11 }
  0x1f   :  { %p2948_p0 = pnand %p2947_p13, %p2941_p10 }
  0x21   :  { %2951 = shalt.err (!%p2948_p0)
}
  0x22   :  { %53 = dma.hbm_to_vmem [thread:$0]  %s3898_s3, 2048, %s48_s14, [#allocation6], %s3002_s29, %s3002_s29, %s3003_s30  }
  0x23   :  { %s2960_s19 = scalar_lea.vmem %s65_s16, 16  ;;  %s2964_s1 = scalar_lea.vmem %s65_s16, 32 }
  0x24   :  { %p2961_p1 = scmp.ne.s32.totalorder %s65_s16, %s2960_s19  ;;  %p2965_p2 = scmp.lt.s32.totalorder %s65_s16, %s65_s16 }
  0x25   :  { %p2966_p3 = scmp.lt.s32.totalorder %s2964_s1, %s2960_s19 }
  0x27   :  { %p2967_p4 = por %p2966_p3, %p2965_p2 }
  0x29   :  { %p2968_p5 = pnand %p2967_p4, %p2961_p1 }
  0x2b   :  { %2971 = shalt.err (!%p2968_p5)
}
  0x2c   :  { %67 = dma.hbm_to_vmem [thread:$0]  %s3901_s6, 16, %s65_s16, [#allocation9]  }
  0x2d   :  { %2992 = dma.done.wait [#allocation3], 2048  }
  0x2e   :  { %2993 = vsyncadd [#allocation3], 4294965248 }
  0x2f   :  { %2994 = dma.done.wait [#allocation6], 4096  }
  0x30   :  { %2995 = vsyncadd [#allocation6], 4294963200 }
  0x31   :  { %2996 = dma.done.wait [#allocation9], 16  }
  0x32   :  { %2997 = vsyncadd [#allocation9], 4294967280  ;;  %v3903_v0 = vmov 0.0   ;;  %v3065_v1 = vld [vmem:[#allocation2 + $0x78] sm:$0xff]  ;;  %v3067_v2 = vld [vmem:[#allocation2 + $0x70] sm:$0xff]  ;;  %v130_v17 = vlaneseq  ;;  %s3008_s22 = smov 64  }
  0x33   :  { %280 = vmatprep.mubr.f32.mxu1 %v3903_v0  ;;  %208 = vmatprep.mubr.f32.mxu0 %v3903_v0  ;;  %v3069_v3 = vld [vmem:[#allocation2 + $0x68] sm:$0xff]  ;;  %v3072_v4 = vld [vmem:[#allocation2 + $0x60] sm:$0xff]  ;;  %v3075_v5 = vld [vmem:[#allocation2 + $0x58] sm:$0xff]  ;;  %v3007_v18 = vmov 1983009808   ;;  %vm140_vm0 = vcmask 523264  }
  0x34   :  { %232 = vmatprep.subr.mxu1 %v3065_v1  ;;  %v3078_v6 = vld [vmem:[#allocation2 + $0x50] sm:$0xff]  ;;  %v3081_v7 = vld [vmem:[#allocation2 + $0x48] sm:$0xff]  ;;  %v3084_v8 = vld [vmem:[#allocation2 + $0x40] sm:$0xff]  ;;  %v291_v19 = vunpack.c.l.s4 %v3007_v18  ;;  %v3115_v20 = vshrl.u32 %v130_v17, 7  ;;  %vm3009_vm1 = vmmov 0   ;;  %s3010_s26 = smov [#allocation10]  }
  0x35   :  { %233 = vmatpush1.msra.mxu1 %v3067_v2  ;;  %v3087_v9 = vld [vmem:[#allocation2 + $0x38] sm:$0xff]  ;;  %v3090_v10 = vld [vmem:[#allocation2 + $0x30] sm:$0xff]  ;;  %v3093_v11 = vld [vmem:[#allocation2 + $0x28] sm:$0xff] }
  0x36   :  { %234 = vmatprep.subr.mxu1 %v3069_v3  ;;  %v3096_v12 = vld [vmem:[#allocation2 + $0x20] sm:$0xff]  ;;  %v3099_v13 = vld [vmem:[#allocation2 + $0x18] sm:$0xff]  ;;  %v3102_v14 = vld [vmem:[#allocation2 + $0x10] sm:$0xff]  ;;  %v292_v21 = vunpack.c.0.s8 %v291_v19 }
  0x37   :  { %235 = vmatpush1.msra.mxu1 %v3072_v4  ;;  %v3105_v15 = vld [vmem:[#allocation2 + $0x8] sm:$0xff]  ;;  %v3108_v16 = vld [vmem:[#allocation2] sm:$0xff]  ;;  %v3129_v37 = vld [vmem:[#allocation7 + $0x78] sm:$0xff] }
  0x38   :  { %236 = vmatprep.subr.mxu1 %v3075_v5  ;;  %v3118_v23 = vsub.s32 %v292_v21, %v3115_v20  ;;  %v215_v26 = vld [vmem:[%s3895_s0] sm:$0xf]  ;;  %v3131_v38 = vld [vmem:[#allocation7 + $0x70] sm:$0xff]  ;;  %v3133_v39 = vld [vmem:[#allocation7 + $0x68] sm:$0xff]  ;;  %160 = vmatprep.subr.mxu0 %v3129_v37 }
  0x39   :  { %237 = vmatpush1.msra.mxu1 %v3078_v6  ;;  %v3136_v40 = vld [vmem:[#allocation7 + $0x60] sm:$0xff]  ;;  %161 = vmatpush1.msra.mxu0 %v3131_v38  ;;  %v3140_v41 = vld [vmem:[#allocation7 + $0x58] sm:$0xff]  ;;  %v3144_v42 = vld [vmem:[#allocation7 + $0x50] sm:$0xff] }
  0x3a   :  { %238 = vmatprep.subr.mxu1 %v3081_v7  ;;  %162 = vmatprep.subr.mxu0 %v3133_v39  ;;  %v3148_v43 = vld [vmem:[#allocation7 + $0x48] sm:$0xff]  ;;  %v3152_v44 = vld [vmem:[#allocation7 + $0x40] sm:$0xff]  ;;  %v3156_v45 = vld [vmem:[#allocation7 + $0x38] sm:$0xff] }
  0x3b   :  { %239 = vmatpush1.msra.mxu1 %v3084_v8  ;;  %163 = vmatpush1.msra.mxu0 %v3136_v40  ;;  %v3160_v46 = vld [vmem:[#allocation7 + $0x30] sm:$0xff]  ;;  %v3164_v47 = vld [vmem:[#allocation7 + $0x28] sm:$0xff]  ;;  %v3168_v48 = vld [vmem:[#allocation7 + $0x20] sm:$0xff] }
  0x3c   :  { %240 = vmatprep.subr.mxu1 %v3087_v9  ;;  %164 = vmatprep.subr.mxu0 %v3140_v41  ;;  %v3172_v49 = vld [vmem:[#allocation7 + $0x18] sm:$0xff]  ;;  %v3176_v50 = vld [vmem:[#allocation7 + $0x10] sm:$0xff]  ;;  %v3180_v51 = vld [vmem:[#allocation7 + $0x8] sm:$0xff] }
  0x3d   :  { %241 = vmatpush1.msra.mxu1 %v3090_v10  ;;  %165 = vmatpush1.msra.mxu0 %v3144_v42  ;;  %3919 = vst [vmem:[#allocation15_spill] sm:$0xff] %v3172_v49  ;;  %3920 = vst [vmem:[#allocation16_spill] sm:$0xff] %v3176_v50  ;;  %v3184_v52 = vld [vmem:[#allocation7] sm:$0xff]  ;;  %v3188_v53 = vld [vmem:[#allocation5 + $0x78] sm:$0xff] }
  0x3e   :  { %242 = vmatprep.subr.mxu1 %v3093_v11  ;;  %166 = vmatprep.subr.mxu0 %v3148_v43  ;;  %3921 = vst [vmem:[#allocation17_spill] sm:$0xff] %v3180_v51  ;;  %3922 = vst [vmem:[#allocation18_spill] sm:$0xff] %v3184_v52  ;;  %v3192_v54 = vld [vmem:[#allocation5 + $0x70] sm:$0xff]  ;;  %v3196_v55 = vld [vmem:[#allocation5 + $0x68] sm:$0xff] }
  0x3f   :  { %243 = vmatpush1.msra.mxu1 %v3096_v12  ;;  %167 = vmatpush1.msra.mxu0 %v3152_v44  ;;  %3923 = vst [vmem:[#allocation19_spill] sm:$0xff] %v3188_v53  ;;  %v3201_v56 = vld [vmem:[#allocation5 + $0x60] sm:$0xff]  ;;  %v3204_v57 = vld [vmem:[#allocation5 + $0x58] sm:$0xff]  ;;  %v3208_v58 = vld [vmem:[#allocation5 + $0x50] sm:$0xff] }
  0x40   :  { %244 = vmatprep.subr.mxu1 %v3099_v13  ;;  %168 = vmatprep.subr.mxu0 %v3156_v45  ;;  %v3212_v59 = vld [vmem:[#allocation5 + $0x48] sm:$0xff]  ;;  %v3215_v60 = vld [vmem:[#allocation5 + $0x40] sm:$0xff]  ;;  %v3218_v61 = vld [vmem:[#allocation5 + $0x38] sm:$0xff] }
  0x41   :  { %245 = vmatpush1.msra.mxu1 %v3102_v14  ;;  %169 = vmatpush1.msra.mxu0 %v3160_v46  ;;  %v3221_v62 = vld [vmem:[#allocation5 + $0x30] sm:$0xff]  ;;  %v3224_v63 = vld [vmem:[#allocation5 + $0x28] sm:$0xff]  ;;  %v3227_v17 = vld [vmem:[#allocation5 + $0x20] sm:$0xff] }
  0x42   :  { %246 = vmatprep.subr.mxu1 %v3105_v15  ;;  %170 = vmatprep.subr.mxu0 %v3164_v47  ;;  %v3230_v18 = vld [vmem:[#allocation5 + $0x18] sm:$0xff]  ;;  %v3233_v19 = vld [vmem:[#allocation5 + $0x10] sm:$0xff]  ;;  %v3236_v21 = vld [vmem:[#allocation5 + $0x8] sm:$0xff] }
  0x43   :  { %247 = vmatpush1.msra.mxu1 %v3108_v16  ;;  %171 = vmatpush1.msra.mxu0 %v3168_v48 }
  0x44   :  { %281 = vmatmul.mubr.f32.vlgmr.msra.gmra.mxu1 %v3903_v0  ;;  %452 = vmatprep.subr.mxu1 %v3129_v37 }
  0x45   :  { %500 = vmatprep.mubr.f32.mxu1 %v3903_v0  ;;  %453 = vmatpush1.msra.mxu1 %v3131_v38 }
  0x46   :  { %454 = vmatprep.subr.mxu1 %v3133_v39  ;;  %172 = vmatprep.subr.mxu0 %v3172_v49 }
  0x47   :  { %455 = vmatpush1.msra.mxu1 %v3136_v40  ;;  %173 = vmatpush1.msra.mxu0 %v3176_v50 }
  0x48   :  { %456 = vmatprep.subr.mxu1 %v3140_v41  ;;  %174 = vmatprep.subr.mxu0 %v3180_v51 }
  0x49   :  { %457 = vmatpush1.msra.mxu1 %v3144_v42  ;;  %175 = vmatpush1.msra.mxu0 %v3184_v52 }
  0x4a   :  { %458 = vmatprep.subr.mxu1 %v3148_v43  ;;  %209 = vmatmul.mubr.f32.vlgmr.msra.gmra.mxu0 %v3903_v0 }
  0x4b   :  { %459 = vmatpush1.msra.mxu1 %v3152_v44  ;;  %346 = vmatprep.subr.mxu0 %v3188_v53 }
  0x4c   :  { %460 = vmatprep.subr.mxu1 %v3156_v45  ;;  %347 = vmatpush1.msra.mxu0 %v3192_v54 }
  0x4d   :  { %461 = vmatpush1.msra.mxu1 %v3160_v46  ;;  %394 = vmatprep.mubr.f32.mxu0 %v3903_v0 }
  0x4e   :  { %462 = vmatprep.subr.mxu1 %v3164_v47  ;;  %348 = vmatprep.subr.mxu0 %v3196_v55 }
  0x4f   :  { %463 = vmatpush1.msra.mxu1 %v3168_v48  ;;  %349 = vmatpush1.msra.mxu0 %v3201_v56 }
  0x50   :  { %464 = vmatprep.subr.mxu1 %v3172_v49  ;;  %350 = vmatprep.subr.mxu0 %v3204_v57 }
  0x51   :  { %465 = vmatpush1.msra.mxu1 %v3176_v50  ;;  %351 = vmatpush1.msra.mxu0 %v3208_v58 }
  0x52   :  { %466 = vmatprep.subr.mxu1 %v3180_v51  ;;  %352 = vmatprep.subr.mxu0 %v3212_v59 }
  0x53   :  { %467 = vmatpush1.msra.mxu1 %v3184_v52  ;;  %353 = vmatpush1.msra.mxu0 %v3215_v60 }
  0x54   :  { %639 = vmatprep.subr.mxu1 %v3188_v53  ;;  %354 = vmatprep.subr.mxu0 %v3218_v61 }
  0x55   :  { %355 = vmatpush1.msra.mxu0 %v3221_v62 }
  0x56   :  { %356 = vmatprep.subr.mxu0 %v3224_v63 }
  0x57   :  { %357 = vmatpush1.msra.mxu0 %v3227_v17 }
  0x58   :  { %358 = vmatprep.subr.mxu0 %v3230_v18 }
  0x59   :  { %359 = vmatpush1.msra.mxu0 %v3233_v19 }
  0x5a   :  { %360 = vmatprep.subr.mxu0 %v3236_v21 }
 0x104   :  { %v282_v22 = vpop.f32.mrf.mxu1 }
 0x106   :  { %v284_v24 = vpop.f32.mrf.mxu1 }
 0x107   :  { %v289_v25 = vcombine.low %v282_v22, %v284_v24 }
 0x109   :  { %v296_v27 = vrot.slane %v289_v25, %v3118_v23 }
 0x10b   :  { %v298_v28 = vadd.f32 %v296_v27, %v215_v26  ;;  %v3245_v26 = vld [vmem:[#allocation5] sm:$0xff] }
 0x10c   :  { %361 = vmatpush1.msra.mxu0 %v3245_v26 }
 0x10d   :  { %306 = vrot.lane.b32.xlu0 %v298_v28, %s3008_s22  ;;  %v2590_v29 = vmul.f32 -1.442695, %v298_v28  ;;  %525 = vmatprep.subr.mxu0 %v3065_v1 }
 0x10f   :  { %2684 = vpow2.f32 %v2590_v29 }
 0x11c   :  { %v2685_v30 = vpop.eup %2684 }
 0x11d   :  { %v302_v31 = vadd.f32 1.0, %v2685_v30 }
 0x11f   :  { %2686 = vrcp.f32 %v302_v31  ;;  %v132_v31 = vsub.s32 0, %v3115_v20 }
 0x12c   :  { %v3125_v34 = vpop.eup %2686 }
 0x12d   :  { %v311_v22 = vmul.f32 0.0, %v3125_v34  ;;  %v320_v28 = vrot.slane %v3125_v34, 2 }
 0x17f   :  { %v307_v32 = vpop.permute.xlu0 %306 }
 0x180   :  { %v308_v33 = vrot.slane %v307_v32, 2  ;;  %v128_v32 = vld [vmem:[%s3899_s4] sm:$0x3] }
 0x182   :  { %2688 = vtanh.f32 %v308_v33  ;;  %v136_v33 = vsub.s32 1, %v3115_v20  ;;  %v2595_v20 = vld [vmem:[%s3895_s0 + $0x4] sm:$0xf] }
 0x18f   :  { %v2689_v35 = vpop.eup %2688 }
 0x190   :  { %v312_v36 = vmul.f32 %v2689_v35, %v3125_v34  ;;  %v210_v34 = vpop.f32.mrf.mxu0  ;;  %v3292_v35 = vrot.slane %v128_v32, %v132_v31 }
 0x192   :  { %314 = vrot.lane.b32.xlu0 %v312_v36, %s3008_s22  ;;  %3924 = vst [vmem:[#allocation20_spill] sm:$0xff] %v3292_v35  ;;  %v3294_v36 = vrot.slane %v128_v32, %v136_v33 }
 0x194   :  { %3925 = vst [vmem:[#allocation21_spill] sm:$0xff] %v3294_v36 }
 0x204   :  { %v315_v24 = vpop.permute.xlu0 %314 }
 0x205   :  { %v3242_v25 = vadd.f32 %v315_v24, %v311_v22  ;;  %v212_v22 = vpop.f32.mrf.mxu0  ;;  %v211_v24 = vadd.f32 %v210_v34, %v3292_v35 }
 0x207   :  { %2690 = vtanh.f32 %v3242_v25 }
 0x214   :  { %v2691_v27 = vpop.eup %2690 }
 0x215   :  { %323 = vrot.lane.b32.xlu1 %v2691_v27, %s3008_s22 }
 0x287   :  { %v324_v29 = vpop.permute.xlu1 %323 }
 0x288   :  { %v326_v30 = vmul.f32 %v324_v29, %v320_v28  ;;  %v213_v28 = vadd.f32 %v212_v22, %v3294_v36 }
 0x28a   :  { %2591 = vmatmul.mubr.msk.f32.vlgmr.msra.gmra.mxu0 %vm140_vm0, %v326_v30 }
 0x28b   :  { %526 = vmatpush1.msra.mxu0 %v3067_v2  ;;  %573 = vmatprep.mubr.f32.mxu0 %v3903_v0 }
 0x28c   :  { %527 = vmatprep.subr.mxu0 %v3069_v3 }
 0x28d   :  { %528 = vmatpush1.msra.mxu0 %v3072_v4 }
 0x28e   :  { %529 = vmatprep.subr.mxu0 %v3075_v5 }
 0x28f   :  { %530 = vmatpush1.msra.mxu0 %v3078_v6 }
 0x290   :  { %531 = vmatprep.subr.mxu0 %v3081_v7 }
 0x291   :  { %532 = vmatpush1.msra.mxu0 %v3084_v8 }
 0x292   :  { %533 = vmatprep.subr.mxu0 %v3087_v9 }
 0x293   :  { %534 = vmatpush1.msra.mxu0 %v3090_v10 }
 0x294   :  { %535 = vmatprep.subr.mxu0 %v3093_v11 }
 0x295   :  { %536 = vmatpush1.msra.mxu0 %v3096_v12 }
 0x296   :  { %537 = vmatprep.subr.mxu0 %v3099_v13 }
 0x297   :  { %538 = vmatpush1.msra.mxu0 %v3102_v14 }
 0x298   :  { %539 = vmatprep.subr.mxu0 %v3105_v15 }
 0x299   :  { %540 = vmatpush1.msra.mxu0 %v3108_v16 }
 0x29a   :  { %2596 = vmatmul.mubr.msk.f32.vlgmr.msra.gmra.mxu0 %vm140_vm0, %v326_v30  ;;  %745 = vmatprep.subr.mxu0 %v3129_v37 }
 0x29b   :  { %746 = vmatpush1.msra.mxu0 %v3131_v38  ;;  %793 = vmatprep.mubr.f32.mxu0 %v3903_v0 }
 0x29c   :  { %747 = vmatprep.subr.mxu0 %v3133_v39 }
 0x29d   :  { %748 = vmatpush1.msra.mxu0 %v3136_v40 }
 0x29e   :  { %749 = vmatprep.subr.mxu0 %v3140_v41 }
 0x29f   :  { %750 = vmatpush1.msra.mxu0 %v3144_v42 }
 0x2a0   :  { %751 = vmatprep.subr.mxu0 %v3148_v43 }
 0x2a1   :  { %752 = vmatpush1.msra.mxu0 %v3152_v44 }
 0x2a2   :  { %753 = vmatprep.subr.mxu0 %v3156_v45 }
 0x2a3   :  { %754 = vmatpush1.msra.mxu0 %v3160_v46 }
 0x2a4   :  { %755 = vmatprep.subr.mxu0 %v3164_v47 }
 0x2a5   :  { %756 = vmatpush1.msra.mxu0 %v3168_v48 }
 0x2a6   :  { %757 = vmatprep.subr.mxu0 %v3172_v49 }
 0x2a7   :  { %758 = vmatpush1.msra.mxu0 %v3176_v50 }
 0x2a8   :  { %759 = vmatprep.subr.mxu0 %v3180_v51 }
 0x2a9   :  { %760 = vmatpush1.msra.mxu0 %v3184_v52 }
 0x2aa   :  { %932 = vmatprep.subr.mxu0 %v3188_v53 }
 0x34a   :  { %v396_v27 = vpop.f32.mrf.mxu0 }
 0x34b   :  { %v401_v29 = vadd.f32 %v396_v27, %v211_v24 }
 0x34c   :  { %v398_v30 = vpop.f32.mrf.mxu0 }
 0x34d   :  { %v402_v0 = vadd.f32 %v398_v30, %v213_v28  ;;  %v2592_v33 = vmul.f32 -1.442695, %v401_v29 }
 0x34f   :  { %2692 = vtanh.f32 %v402_v0 }
 0x350   :  { %2694 = vpow2.f32 %v2592_v33 }
 0x35a   :  { %v575_v53 = vpop.f32.mrf.mxu0 }
 0x35c   :  { %v577_v52 = vpop.f32.mrf.mxu0  ;;  %v2693_v51 = vpop.eup %2692 }
 0x35d   :  { %v582_v50 = vcombine.low %v575_v53, %v577_v52  ;;  %418 = vrot.lane.b32.xlu1 %v2693_v51, %s3008_s22  ;;  %v2695_v34 = vpop.eup %2694 }
 0x35e   :  { %v409_v22 = vadd.f32 1.0, %v2695_v34 }
 0x35f   :  { %v589_v31 = vrot.slane %v582_v50, %v3118_v23 }
 0x360   :  { %2696 = vrcp.f32 %v409_v22 }
 0x361   :  { %v591_v32 = vadd.f32 %v2595_v20, %v589_v31 }
 0x363   :  { %599 = vrot.lane.b32.xlu0 %v591_v32, %s3008_s22  ;;  %v2597_v24 = vmul.f32 -1.442695, %v591_v32 }
 0x365   :  { %2698 = vpow2.f32 %v2597_v24 }
 0x36d   :  { %v2697_v27 = vpop.eup %2696 }
 0x36e   :  { %v416_v31 = vmul.f32 0.0, %v2697_v27 }
 0x372   :  { %v2699_v52 = vpop.eup %2698 }
 0x373   :  { %v595_v28 = vadd.f32 1.0, %v2699_v52 }
 0x375   :  { %2700 = vrcp.f32 %v595_v28 }
 0x382   :  { %v2701_v50 = vpop.eup %2700 }
 0x383   :  { %v604_v22 = vmul.f32 %v2701_v50, %v3242_v25  ;;  %v3926_v25 = vmov 0.0  }
 0x3cf   :  { %v419_v53 = vpop.permute.xlu1 %418 }
 0x3d0   :  { %v421_v51 = vmul.f32 %v2697_v27, %v419_v53  ;;  %v2593_v53 = vmul.f32 -1.442695, %v402_v0  ;;  %v613_v0 = vrot.slane %v2701_v50, 2 }
 0x3d2   :  { %423 = vrot.lane.b32.xlu1 %v421_v51, %s3008_s22 }
 0x3d5   :  { %v600_v30 = vpop.permute.xlu0 %599 }
 0x3d6   :  { %v601_v36 = vrot.slane %v600_v30, 2 }
 0x3d8   :  { %2702 = vtanh.f32 %v601_v36 }
 0x3e5   :  { %v2703_v20 = vpop.eup %2702 }
 0x3e6   :  { %v605_v29 = vmul.f32 %v2703_v20, %v2701_v50  ;;  %v3927_v50 = vld [vmem:[#allocation16_spill] sm:$0xff] }
 0x3e8   :  { %607 = vrot.lane.b32.xlu0 %v605_v29, %s3008_s22 }
 0x444   :  { %v424_v32 = vpop.permute.xlu1 %423 }
 0x445   :  { %v3306_v33 = vadd.f32 %v424_v32, %v416_v31  ;;  %v3928_v32 = vld [vmem:[#allocation17_spill] sm:$0xff] }
 0x447   :  { %2704 = vtanh.f32 %v3306_v33 }
 0x454   :  { %v2705_v34 = vpop.eup %2704 }
 0x455   :  { %429 = vrot.lane.b32.xlu1 %v2705_v34, %s3008_s22  ;;  %v3929_v34 = vld [vmem:[#allocation18_spill] sm:$0xff] }
 0x45a   :  { %v608_v24 = vpop.permute.xlu0 %607 }
 0x45b   :  { %v3311_v52 = vadd.f32 %v608_v24, %v604_v22  ;;  %v3930_v22 = vld [vmem:[#allocation19_spill] sm:$0xff] }
 0x45d   :  { %2706 = vtanh.f32 %v3311_v52 }
 0x45e   :  { %2708 = vpow2.f32 %v2593_v53 }
 0x46a   :  { %v2707_v36 = vpop.eup %2706 }
 0x46b   :  { %616 = vrot.lane.b32.xlu0 %v2707_v36, %s3008_s22  ;;  %v2709_v27 = vpop.eup %2708 }
 0x46c   :  { %v410_v51 = vadd.f32 1.0, %v2709_v27 }
 0x46e   :  { %2710 = vrcp.f32 %v410_v51  ;;  %v3931_v51 = vld [vmem:[#allocation21_spill] sm:$0xff] }
 0x47b   :  { %v2711_v28 = vpop.eup %2710 }
 0x4c7   :  { %v430_v30 = vpop.permute.xlu1 %429 }
 0x4c8   :  { %v432_v20 = vmul.f32 %v2711_v28, %v430_v30 }
 0x4ca   :  { %2594 = vmatmul.mubr.msk.f32.vlgmr.msra.gmra.mxu1 %vm140_vm0, %v432_v20 }
 0x4cb   :  { %640 = vmatpush1.msra.mxu1 %v3192_v54  ;;  %687 = vmatprep.mubr.f32.mxu1 %v3926_v25 }
 0x4cc   :  { %641 = vmatprep.subr.mxu1 %v3196_v55 }
 0x4cd   :  { %642 = vmatpush1.msra.mxu1 %v3201_v56 }
 0x4ce   :  { %643 = vmatprep.subr.mxu1 %v3204_v57 }
 0x4cf   :  { %644 = vmatpush1.msra.mxu1 %v3208_v58 }
 0x4d0   :  { %645 = vmatprep.subr.mxu1 %v3212_v59 }
 0x4d1   :  { %646 = vmatpush1.msra.mxu1 %v3215_v60 }
 0x4d2   :  { %647 = vmatprep.subr.mxu1 %v3218_v61 }
 0x4d3   :  { %648 = vmatpush1.msra.mxu1 %v3221_v62 }
 0x4d4   :  { %649 = vmatprep.subr.mxu1 %v3224_v63 }
 0x4d5   :  { %650 = vmatpush1.msra.mxu1 %v3227_v17 }
 0x4d6   :  { %651 = vmatprep.subr.mxu1 %v3230_v18 }
 0x4d7   :  { %652 = vmatpush1.msra.mxu1 %v3233_v19 }
 0x4d8   :  { %653 = vmatprep.subr.mxu1 %v3236_v21 }
 0x4d9   :  { %654 = vmatpush1.msra.mxu1 %v3245_v26 }
 0x4da   :  { %818 = vmatprep.subr.mxu1 %v3065_v1 }
 0x4dd   :  { %v617_v29 = vpop.permute.xlu0 %616 }
 0x4de   :  { %v619_v31 = vmul.f32 %v617_v29, %v613_v0 }
 0x4e0   :  { %2598 = vmatmul.mubr.msk.f32.vlgmr.msra.gmra.mxu1 %vm140_vm0, %v619_v31 }
 0x4e1   :  { %819 = vmatpush1.msra.mxu1 %v3067_v2  ;;  %866 = vmatprep.mubr.f32.mxu1 %v3926_v25 }
 0x4e2   :  { %820 = vmatprep.subr.mxu1 %v3069_v3 }
 0x4e3   :  { %821 = vmatpush1.msra.mxu1 %v3072_v4 }
 0x4e4   :  { %822 = vmatprep.subr.mxu1 %v3075_v5 }
 0x4e5   :  { %823 = vmatpush1.msra.mxu1 %v3078_v6 }
 0x4e6   :  { %824 = vmatprep.subr.mxu1 %v3081_v7 }
 0x4e7   :  { %825 = vmatpush1.msra.mxu1 %v3084_v8 }
 0x4e8   :  { %826 = vmatprep.subr.mxu1 %v3087_v9 }
 0x4e9   :  { %827 = vmatpush1.msra.mxu1 %v3090_v10 }
 0x4ea   :  { %828 = vmatprep.subr.mxu1 %v3093_v11 }
 0x4eb   :  { %829 = vmatpush1.msra.mxu1 %v3096_v12 }
 0x4ec   :  { %830 = vmatprep.subr.mxu1 %v3099_v13 }
 0x4ed   :  { %831 = vmatpush1.msra.mxu1 %v3102_v14 }
 0x4ee   :  { %832 = vmatprep.subr.mxu1 %v3105_v15 }
 0x4ef   :  { %833 = vmatpush1.msra.mxu1 %v3108_v16 }
 0x4f0   :  { %2603 = vmatmul.mubr.msk.f32.vlgmr.msra.gmra.mxu1 %vm140_vm0, %v619_v31  ;;  %1038 = vmatprep.subr.mxu1 %v3129_v37 }
 0x4f1   :  { %1039 = vmatpush1.msra.mxu1 %v3131_v38  ;;  %1086 = vmatprep.mubr.f32.mxu1 %v3926_v25 }
 0x4f2   :  { %1040 = vmatprep.subr.mxu1 %v3133_v39 }
 0x4f3   :  { %1041 = vmatpush1.msra.mxu1 %v3136_v40 }
 0x4f4   :  { %1042 = vmatprep.subr.mxu1 %v3140_v41 }
 0x4f5   :  { %1043 = vmatpush1.msra.mxu1 %v3144_v42 }
 0x4f6   :  { %1044 = vmatprep.subr.mxu1 %v3148_v43 }
 0x4f7   :  { %1045 = vmatpush1.msra.mxu1 %v3152_v44 }
 0x4f8   :  { %1046 = vmatprep.subr.mxu1 %v3156_v45 }
 0x4f9   :  { %1047 = vmatpush1.msra.mxu1 %v3160_v46 }
 0x4fa   :  { %1048 = vmatprep.subr.mxu1 %v3164_v47 }
 0x4fb   :  { %1049 = vmatpush1.msra.mxu1 %v3168_v48 }
 0x4fc   :  { %1050 = vmatprep.subr.mxu1 %v3172_v49 }
 0x4fd   :  { %1051 = vmatpush1.msra.mxu1 %v3927_v50 }
 0x4fe   :  { %1052 = vmatprep.subr.mxu1 %v3928_v32 }
 0x4ff   :  { %1053 = vmatpush1.msra.mxu1 %v3929_v34 }
 0x500   :  { %1225 = vmatprep.subr.mxu1 %v3930_v22  ;;  %v2602_v22 = vld [vmem:[%s3895_s0 + $0x8] sm:$0xf] }
 0x58a   :  { %v502_v24 = vpop.f32.mrf.mxu1 }
 0x58b   :  { %v503_v53 = vadd.f32 %v502_v24, %v3292_v35 }
 0x58c   :  { %v504_v36 = vpop.f32.mrf.mxu1 }
 0x58d   :  { %v505_v28 = vadd.f32 %v504_v36, %v3931_v51 }
 0x5a0   :  { %v689_v27 = vpop.f32.mrf.mxu1 }
 0x5a1   :  { %v694_v30 = vadd.f32 %v689_v27, %v503_v53 }
 0x5a2   :  { %v691_v20 = vpop.f32.mrf.mxu1 }
 0x5a3   :  { %v695_v0 = vadd.f32 %v691_v20, %v505_v28  ;;  %v2599_v36 = vmul.f32 -1.442695, %v694_v30 }
 0x5a5   :  { %2712 = vtanh.f32 %v695_v0 }
 0x5a6   :  { %2714 = vpow2.f32 %v2599_v36 }
 0x5b0   :  { %v868_v29 = vpop.f32.mrf.mxu1 }
 0x5b2   :  { %v870_v31 = vpop.f32.mrf.mxu1  ;;  %v2713_v50 = vpop.eup %2712 }
 0x5b3   :  { %v875_v49 = vcombine.low %v868_v29, %v870_v31  ;;  %711 = vrot.lane.b32.xlu1 %v2713_v50, %s3008_s22  ;;  %v2715_v53 = vpop.eup %2714 }
 0x5b4   :  { %v702_v27 = vadd.f32 1.0, %v2715_v53 }
 0x5b5   :  { %v882_v34 = vrot.slane %v875_v49, %v3118_v23 }
 0x5b6   :  { %2716 = vrcp.f32 %v702_v27 }
 0x5b7   :  { %v884_v24 = vadd.f32 %v2602_v22, %v882_v34 }
 0x5b9   :  { %892 = vrot.lane.b32.xlu0 %v884_v24, %s3008_s22  ;;  %v2604_v28 = vmul.f32 -1.442695, %v884_v24 }
 0x5bb   :  { %2718 = vpow2.f32 %v2604_v28  ;;  %v2600_v28 = vmul.f32 -1.442695, %v695_v0 }
 0x5c3   :  { %v2717_v20 = vpop.eup %2716 }
 0x5c4   :  { %v709_v30 = vmul.f32 %v2717_v20, %v3306_v33 }
 0x5c8   :  { %v2719_v29 = vpop.eup %2718 }
 0x5c9   :  { %v888_v51 = vadd.f32 1.0, %v2719_v29 }
 0x5cb   :  { %2720 = vrcp.f32 %v888_v51 }
 0x5d8   :  { %v2721_v49 = vpop.eup %2720 }
 0x5d9   :  { %v897_v27 = vmul.f32 %v2721_v49, %v3311_v52  ;;  %v906_v52 = vrot.slane %v2721_v49, 2 }
 0x625   :  { %v712_v31 = vpop.permute.xlu1 %711 }
 0x626   :  { %v714_v50 = vmul.f32 %v2717_v20, %v712_v31 }
 0x628   :  { %716 = vrot.lane.b32.xlu1 %v714_v50, %s3008_s22 }
 0x62b   :  { %v893_v35 = vpop.permute.xlu0 %892 }
 0x62c   :  { %v894_v32 = vrot.slane %v893_v35, 2 }
 0x62e   :  { %2722 = vtanh.f32 %v894_v32 }
 0x63b   :  { %v2723_v34 = vpop.eup %2722 }
 0x63c   :  { %v898_v22 = vmul.f32 %v2723_v34, %v2721_v49  ;;  %v3932_v49 = vld [vmem:[#allocation15_spill] sm:$0xff] }
 0x63e   :  { %900 = vrot.lane.b32.xlu0 %v898_v22, %s3008_s22  ;;  %v3933_v22 = vld [vmem:[#allocation16_spill] sm:$0xff] }
 0x69a   :  { %v717_v24 = vpop.permute.xlu1 %716 }
 0x69b   :  { %v3380_v36 = vadd.f32 %v717_v24, %v709_v30  ;;  %v3934_v30 = vld [vmem:[#allocation17_spill] sm:$0xff]  ;;  %v3935_v24 = vld [vmem:[#allocation18_spill] sm:$0xff] }
 0x69d   :  { %2724 = vtanh.f32 %v3380_v36 }
 0x6aa   :  { %v2725_v53 = vpop.eup %2724 }
 0x6ab   :  { %722 = vrot.lane.b32.xlu1 %v2725_v53, %s3008_s22  ;;  %v3936_v53 = vld [vmem:[#allocation19_spill] sm:$0xff] }
 0x6b0   :  { %v901_v35 = vpop.permute.xlu0 %900 }
 0x6b1   :  { %v3385_v51 = vadd.f32 %v901_v35, %v897_v27 }
 0x6b3   :  { %2726 = vtanh.f32 %v3385_v51 }
 0x6b4   :  { %2728 = vpow2.f32 %v2600_v28 }
 0x6c0   :  { %v2727_v32 = vpop.eup %2726 }
 0x6c1   :  { %909 = vrot.lane.b32.xlu0 %v2727_v32, %s3008_s22  ;;  %v2729_v33 = vpop.eup %2728  ;;  %v3937_v32 = vld [vmem:[#allocation20_spill] sm:$0xff] }
 0x6c2   :  { %v703_v20 = vadd.f32 1.0, %v2729_v33 }
 0x6c4   :  { %2730 = vrcp.f32 %v703_v20  ;;  %v3938_v20 = vld [vmem:[#allocation21_spill] sm:$0xff] }
 0x6d1   :  { %v2731_v29 = vpop.eup %2730 }
 0x71d   :  { %v723_v31 = vpop.permute.xlu1 %722 }
 0x71e   :  { %v725_v50 = vmul.f32 %v2731_v29, %v723_v31 }
 0x720   :  { %2601 = vmatmul.mubr.msk.f32.vlgmr.msra.gmra.mxu0 %vm140_vm0, %v725_v50 }
 0x721   :  { %933 = vmatpush1.msra.mxu0 %v3192_v54  ;;  %980 = vmatprep.mubr.f32.mxu0 %v3926_v25 }
 0x722   :  { %934 = vmatprep.subr.mxu0 %v3196_v55 }
 0x723   :  { %935 = vmatpush1.msra.mxu0 %v3201_v56 }
 0x724   :  { %936 = vmatprep.subr.mxu0 %v3204_v57 }
 0x725   :  { %937 = vmatpush1.msra.mxu0 %v3208_v58 }
 0x726   :  { %938 = vmatprep.subr.mxu0 %v3212_v59 }
 0x727   :  { %939 = vmatpush1.msra.mxu0 %v3215_v60 }
 0x728   :  { %940 = vmatprep.subr.mxu0 %v3218_v61 }
 0x729   :  { %941 = vmatpush1.msra.mxu0 %v3221_v62 }
 0x72a   :  { %942 = vmatprep.subr.mxu0 %v3224_v63 }
 0x72b   :  { %943 = vmatpush1.msra.mxu0 %v3227_v17 }
 0x72c   :  { %944 = vmatprep.subr.mxu0 %v3230_v18 }
 0x72d   :  { %945 = vmatpush1.msra.mxu0 %v3233_v19 }
 0x72e   :  { %946 = vmatprep.subr.mxu0 %v3236_v21 }
 0x72f   :  { %947 = vmatpush1.msra.mxu0 %v3245_v26 }
 0x730   :  { %1111 = vmatprep.subr.mxu0 %v3065_v1 }
 0x733   :  { %v910_v0 = vpop.permute.xlu0 %909 }
 0x734   :  { %v912_v34 = vmul.f32 %v910_v0, %v906_v52 }
 0x736   :  { %2605 = vmatmul.mubr.msk.f32.vlgmr.msra.gmra.mxu0 %vm140_vm0, %v912_v34 }
 0x737   :  { %1112 = vmatpush1.msra.mxu0 %v3067_v2  ;;  %1159 = vmatprep.mubr.f32.mxu0 %v3926_v25 }
 0x738   :  { %1113 = vmatprep.subr.mxu0 %v3069_v3 }
 0x739   :  { %1114 = vmatpush1.msra.mxu0 %v3072_v4 }
 0x73a   :  { %1115 = vmatprep.subr.mxu0 %v3075_v5 }
 0x73b   :  { %1116 = vmatpush1.msra.mxu0 %v3078_v6 }
 0x73c   :  { %1117 = vmatprep.subr.mxu0 %v3081_v7 }
 0x73d   :  { %1118 = vmatpush1.msra.mxu0 %v3084_v8 }
 0x73e   :  { %1119 = vmatprep.subr.mxu0 %v3087_v9 }
 0x73f   :  { %1120 = vmatpush1.msra.mxu0 %v3090_v10 }
 0x740   :  { %1121 = vmatprep.subr.mxu0 %v3093_v11 }
 0x741   :  { %1122 = vmatpush1.msra.mxu0 %v3096_v12 }
 0x742   :  { %1123 = vmatprep.subr.mxu0 %v3099_v13 }
 0x743   :  { %1124 = vmatpush1.msra.mxu0 %v3102_v14 }
 0x744   :  { %1125 = vmatprep.subr.mxu0 %v3105_v15 }
 0x745   :  { %1126 = vmatpush1.msra.mxu0 %v3108_v16 }
 0x746   :  { %2610 = vmatmul.mubr.msk.f32.vlgmr.msra.gmra.mxu0 %vm140_vm0, %v912_v34  ;;  %1331 = vmatprep.subr.mxu0 %v3129_v37 }
 0x747   :  { %1332 = vmatpush1.msra.mxu0 %v3131_v38  ;;  %1379 = vmatprep.mubr.f32.mxu0 %v3926_v25 }
 0x748   :  { %1333 = vmatprep.subr.mxu0 %v3133_v39 }
 0x749   :  { %1334 = vmatpush1.msra.mxu0 %v3136_v40 }
 0x74a   :  { %1335 = vmatprep.subr.mxu0 %v3140_v41 }
 0x74b   :  { %1336 = vmatpush1.msra.mxu0 %v3144_v42 }
 0x74c   :  { %1337 = vmatprep.subr.mxu0 %v3148_v43 }
 0x74d   :  { %1338 = vmatpush1.msra.mxu0 %v3152_v44 }
 0x74e   :  { %1339 = vmatprep.subr.mxu0 %v3156_v45 }
 0x74f   :  { %1340 = vmatpush1.msra.mxu0 %v3160_v46 }
 0x750   :  { %1341 = vmatprep.subr.mxu0 %v3164_v47 }
 0x751   :  { %1342 = vmatpush1.msra.mxu0 %v3168_v48 }
 0x752   :  { %1343 = vmatprep.subr.mxu0 %v3932_v49 }
 0x753   :  { %1344 = vmatpush1.msra.mxu0 %v3933_v22 }
 0x754   :  { %1345 = vmatprep.subr.mxu0 %v3934_v30 }
 0x755   :  { %1346 = vmatpush1.msra.mxu0 %v3935_v24 }
 0x756   :  { %1518 = vmatprep.subr.mxu0 %v3936_v53  ;;  %v2609_v53 = vld [vmem:[%s3895_s0 + $0xc] sm:$0xf] }
 0x7e0   :  { %v795_v27 = vpop.f32.mrf.mxu0 }
 0x7e1   :  { %v796_v28 = vadd.f32 %v795_v27, %v3937_v32 }
 0x7e2   :  { %v797_v35 = vpop.f32.mrf.mxu0 }
 0x7e3   :  { %v798_v29 = vadd.f32 %v797_v35, %v3938_v20 }
 0x7f6   :  { %v982_v33 = vpop.f32.mrf.mxu0 }
 0x7f7   :  { %v987_v31 = vadd.f32 %v982_v33, %v796_v28 }
 0x7f8   :  { %v984_v50 = vpop.f32.mrf.mxu0 }
 0x7f9   :  { %v988_v52 = vadd.f32 %v984_v50, %v798_v29  ;;  %v2606_v35 = vmul.f32 -1.442695, %v987_v31 }
 0x7fb   :  { %2732 = vtanh.f32 %v988_v52 }
 0x7fc   :  { %2734 = vpow2.f32 %v2606_v35 }
 0x806   :  { %v1161_v0 = vpop.f32.mrf.mxu0 }
 0x808   :  { %v1163_v34 = vpop.f32.mrf.mxu0  ;;  %v2733_v22 = vpop.eup %2732 }
 0x809   :  { %v1168_v49 = vcombine.low %v1161_v0, %v1163_v34  ;;  %1004 = vrot.lane.b32.xlu1 %v2733_v22, %s3008_s22  ;;  %v2735_v28 = vpop.eup %2734 }
 0x80a   :  { %v995_v33 = vadd.f32 1.0, %v2735_v28 }
 0x80b   :  { %v1175_v24 = vrot.slane %v1168_v49, %v3118_v23 }
 0x80c   :  { %2736 = vrcp.f32 %v995_v33 }
 0x80d   :  { %v1177_v27 = vadd.f32 %v2609_v53, %v1175_v24 }
 0x80f   :  { %1185 = vrot.lane.b32.xlu0 %v1177_v27, %s3008_s22  ;;  %v2611_v29 = vmul.f32 -1.442695, %v1177_v27 }
 0x811   :  { %2738 = vpow2.f32 %v2611_v29  ;;  %v2607_v29 = vmul.f32 -1.442695, %v988_v52 }
 0x819   :  { %v2737_v50 = vpop.eup %2736 }
 0x81a   :  { %v1002_v31 = vmul.f32 %v2737_v50, %v3380_v36 }
 0x81e   :  { %v2739_v0 = vpop.eup %2738 }
 0x81f   :  { %v1181_v20 = vadd.f32 1.0, %v2739_v0 }
 0x821   :  { %2740 = vrcp.f32 %v1181_v20 }
 0x82e   :  { %v2741_v49 = vpop.eup %2740 }
 0x82f   :  { %v1190_v33 = vmul.f32 %v2741_v49, %v3385_v51  ;;  %v1199_v51 = vrot.slane %v2741_v49, 2 }
 0x87b   :  { %v1005_v34 = vpop.permute.xlu1 %1004 }
 0x87c   :  { %v1007_v22 = vmul.f32 %v2737_v50, %v1005_v34 }
 0x87e   :  { %1009 = vrot.lane.b32.xlu1 %v1007_v22, %s3008_s22 }
 0x881   :  { %v1186_v32 = vpop.permute.xlu0 %1185 }
 0x882   :  { %v1187_v30 = vrot.slane %v1186_v32, 2 }
 0x884   :  { %2742 = vtanh.f32 %v1187_v30 }
 0x891   :  { %v2743_v24 = vpop.eup %2742 }
 0x892   :  { %v1191_v53 = vmul.f32 %v2743_v24, %v2741_v49 }
 0x894   :  { %1193 = vrot.lane.b32.xlu0 %v1191_v53, %s3008_s22 }
 0x8f0   :  { %v1010_v27 = vpop.permute.xlu1 %1009 }
 0x8f1   :  { %v3454_v35 = vadd.f32 %v1010_v27, %v1002_v31 }
 0x8f3   :  { %2744 = vtanh.f32 %v3454_v35 }
 0x900   :  { %v2745_v28 = vpop.eup %2744 }
 0x901   :  { %1015 = vrot.lane.b32.xlu1 %v2745_v28, %s3008_s22 }
 0x906   :  { %v1194_v32 = vpop.permute.xlu0 %1193 }
 0x907   :  { %v3459_v20 = vadd.f32 %v1194_v32, %v1190_v33 }
 0x909   :  { %2746 = vtanh.f32 %v3459_v20 }
 0x90a   :  { %2748 = vpow2.f32 %v2607_v29 }
 0x916   :  { %v2747_v30 = vpop.eup %2746 }
 0x917   :  { %1202 = vrot.lane.b32.xlu0 %v2747_v30, %s3008_s22  ;;  %v2749_v36 = vpop.eup %2748 }
 0x918   :  { %v996_v50 = vadd.f32 1.0, %v2749_v36 }
 0x91a   :  { %2750 = vrcp.f32 %v996_v50 }
 0x927   :  { %v2751_v0 = vpop.eup %2750 }
 0x973   :  { %v1016_v34 = vpop.permute.xlu1 %1015 }
 0x974   :  { %v1018_v22 = vmul.f32 %v2751_v0, %v1016_v34 }
 0x976   :  { %2608 = vmatmul.mubr.msk.f32.vlgmr.msra.gmra.mxu1 %vm140_vm0, %v1018_v22 }
 0x977   :  { %1226 = vmatpush1.msra.mxu1 %v3192_v54  ;;  %1273 = vmatprep.mubr.f32.mxu1 %v3926_v25 }
 0x978   :  { %1227 = vmatprep.subr.mxu1 %v3196_v55 }
 0x979   :  { %1228 = vmatpush1.msra.mxu1 %v3201_v56 }
 0x97a   :  { %1229 = vmatprep.subr.mxu1 %v3204_v57 }
 0x97b   :  { %1230 = vmatpush1.msra.mxu1 %v3208_v58 }
 0x97c   :  { %1231 = vmatprep.subr.mxu1 %v3212_v59 }
 0x97d   :  { %1232 = vmatpush1.msra.mxu1 %v3215_v60 }
 0x97e   :  { %1233 = vmatprep.subr.mxu1 %v3218_v61 }
 0x97f   :  { %1234 = vmatpush1.msra.mxu1 %v3221_v62 }
 0x980   :  { %1235 = vmatprep.subr.mxu1 %v3224_v63 }
 0x981   :  { %1236 = vmatpush1.msra.mxu1 %v3227_v17 }
 0x982   :  { %1237 = vmatprep.subr.mxu1 %v3230_v18 }
 0x983   :  { %1238 = vmatpush1.msra.mxu1 %v3233_v19 }
 0x984   :  { %1239 = vmatprep.subr.mxu1 %v3236_v21 }
 0x985   :  { %1240 = vmatpush1.msra.mxu1 %v3245_v26 }
 0x986   :  { %1404 = vmatprep.subr.mxu1 %v3065_v1  ;;  %v3939_v1 = vld [vmem:[#allocation15_spill] sm:$0xff] }
 0x989   :  { %v1203_v52 = vpop.permute.xlu0 %1202 }
 0x98a   :  { %v1205_v24 = vmul.f32 %v1203_v52, %v1199_v51 }
 0x98c   :  { %2612 = vmatmul.mubr.msk.f32.vlgmr.msra.gmra.mxu1 %vm140_vm0, %v1205_v24 }
 0x98d   :  { %1405 = vmatpush1.msra.mxu1 %v3067_v2  ;;  %1452 = vmatprep.mubr.f32.mxu1 %v3926_v25  ;;  %v3940_v2 = vld [vmem:[#allocation16_spill] sm:$0xff] }
 0x98e   :  { %1406 = vmatprep.subr.mxu1 %v3069_v3  ;;  %v3941_v3 = vld [vmem:[#allocation17_spill] sm:$0xff] }
 0x98f   :  { %1407 = vmatpush1.msra.mxu1 %v3072_v4  ;;  %v3942_v4 = vld [vmem:[#allocation18_spill] sm:$0xff] }
 0x990   :  { %1408 = vmatprep.subr.mxu1 %v3075_v5  ;;  %v3943_v5 = vld [vmem:[#allocation19_spill] sm:$0xff] }
 0x991   :  { %1409 = vmatpush1.msra.mxu1 %v3078_v6 }
 0x992   :  { %1410 = vmatprep.subr.mxu1 %v3081_v7 }
 0x993   :  { %1411 = vmatpush1.msra.mxu1 %v3084_v8  ;;  %v3944_v8 = vld [vmem:[#allocation20_spill] sm:$0xff] }
 0x994   :  { %1412 = vmatprep.subr.mxu1 %v3087_v9 }
 0x995   :  { %1413 = vmatpush1.msra.mxu1 %v3090_v10 }
 0x996   :  { %1414 = vmatprep.subr.mxu1 %v3093_v11  ;;  %v3945_v11 = vld [vmem:[#allocation21_spill] sm:$0xff] }
 0x997   :  { %1415 = vmatpush1.msra.mxu1 %v3096_v12 }
 0x998   :  { %1416 = vmatprep.subr.mxu1 %v3099_v13 }
 0x999   :  { %1417 = vmatpush1.msra.mxu1 %v3102_v14 }
 0x99a   :  { %1418 = vmatprep.subr.mxu1 %v3105_v15 }
 0x99b   :  { %1419 = vmatpush1.msra.mxu1 %v3108_v16 }
 0x99c   :  { %2617 = vmatmul.mubr.msk.f32.vlgmr.msra.gmra.mxu1 %vm140_vm0, %v1205_v24  ;;  %1624 = vmatprep.subr.mxu1 %v3129_v37 }
 0x99d   :  { %1625 = vmatpush1.msra.mxu1 %v3131_v38  ;;  %1672 = vmatprep.mubr.f32.mxu1 %v3926_v25 }
 0x99e   :  { %1626 = vmatprep.subr.mxu1 %v3133_v39 }
 0x99f   :  { %1627 = vmatpush1.msra.mxu1 %v3136_v40  ;;  %v2616_v40 = vld [vmem:[%s3895_s0 + $0x10] sm:$0xf] }
 0x9a0   :  { %1628 = vmatprep.subr.mxu1 %v3140_v41 }
 0x9a1   :  { %1629 = vmatpush1.msra.mxu1 %v3144_v42 }
 0x9a2   :  { %1630 = vmatprep.subr.mxu1 %v3148_v43 }
 0x9a3   :  { %1631 = vmatpush1.msra.mxu1 %v3152_v44 }
 0x9a4   :  { %1632 = vmatprep.subr.mxu1 %v3156_v45 }
 0x9a5   :  { %1633 = vmatpush1.msra.mxu1 %v3160_v46 }
 0x9a6   :  { %1634 = vmatprep.subr.mxu1 %v3164_v47 }
 0x9a7   :  { %1635 = vmatpush1.msra.mxu1 %v3168_v48 }
 0x9a8   :  { %1636 = vmatprep.subr.mxu1 %v3939_v1 }
 0x9a9   :  { %1637 = vmatpush1.msra.mxu1 %v3940_v2 }
 0x9aa   :  { %1638 = vmatprep.subr.mxu1 %v3941_v3 }
 0x9ab   :  { %1639 = vmatpush1.msra.mxu1 %v3942_v4 }
 0x9ac   :  { %1811 = vmatprep.subr.mxu1 %v3943_v5  ;;  %v3595_v5 = vld [vmem:[#allocation2 + $0x10] sm:$0xff] }
 0xa36   :  { %v1088_v6 = vpop.f32.mrf.mxu1 }
 0xa37   :  { %v1089_v9 = vadd.f32 %v1088_v6, %v3944_v8  ;;  %v3598_v6 = vld [vmem:[#allocation2 + $0x8] sm:$0xff] }
 0xa38   :  { %v1090_v7 = vpop.f32.mrf.mxu1 }
 0xa39   :  { %v1091_v12 = vadd.f32 %v1090_v7, %v3945_v11  ;;  %v3601_v7 = vld [vmem:[#allocation2] sm:$0xff] }
 0xa4c   :  { %v1275_v10 = vpop.f32.mrf.mxu1 }
 0xa4d   :  { %v1280_v13 = vadd.f32 %v1275_v10, %v1089_v9  ;;  %v3605_v9 = vld [vmem:[#allocation7 + $0x78] sm:$0xff]  ;;  %v3608_v10 = vld [vmem:[#allocation7 + $0x70] sm:$0xff] }
 0xa4e   :  { %v1277_v14 = vpop.f32.mrf.mxu1 }
 0xa4f   :  { %v1281_v15 = vadd.f32 %v1277_v14, %v1091_v12  ;;  %v2613_v43 = vmul.f32 -1.442695, %v1280_v13  ;;  %v3612_v12 = vld [vmem:[#allocation7 + $0x68] sm:$0xff]  ;;  %v3615_v13 = vld [vmem:[#allocation7 + $0x60] sm:$0xff]  ;;  %v3618_v14 = vld [vmem:[#allocation7 + $0x58] sm:$0xff] }
 0xa51   :  { %2752 = vtanh.f32 %v1281_v15  ;;  %v2614_v24 = vmul.f32 -1.442695, %v1281_v15  ;;  %v3621_v15 = vld [vmem:[#allocation7 + $0x50] sm:$0xff] }
 0xa52   :  { %2754 = vpow2.f32 %v2613_v43  ;;  %v3645_v43 = vld [vmem:[#allocation7 + $0x10] sm:$0xff] }
 0xa5c   :  { %v1454_v16 = vpop.f32.mrf.mxu1 }
 0xa5e   :  { %v1456_v37 = vpop.f32.mrf.mxu1  ;;  %v2753_v38 = vpop.eup %2752 }
 0xa5f   :  { %v1461_v39 = vcombine.low %v1454_v16, %v1456_v37  ;;  %1297 = vrot.lane.b32.xlu1 %v2753_v38, %s3008_s22  ;;  %v2755_v44 = vpop.eup %2754  ;;  %v3624_v16 = vld [vmem:[#allocation7 + $0x48] sm:$0xff]  ;;  %v3627_v37 = vld [vmem:[#allocation7 + $0x40] sm:$0xff]  ;;  %v3630_v38 = vld [vmem:[#allocation7 + $0x38] sm:$0xff] }
 0xa60   :  { %v1288_v45 = vadd.f32 1.0, %v2755_v44  ;;  %v3648_v44 = vld [vmem:[#allocation7 + $0x8] sm:$0xff] }
 0xa61   :  { %v1468_v41 = vrot.slane %v1461_v39, %v3118_v23  ;;  %v3633_v39 = vld [vmem:[#allocation7 + $0x30] sm:$0xff] }
 0xa62   :  { %2756 = vrcp.f32 %v1288_v45  ;;  %v3651_v45 = vld [vmem:[#allocation7] sm:$0xff] }
 0xa63   :  { %v1470_v42 = vadd.f32 %v2616_v40, %v1468_v41  ;;  %v3636_v40 = vld [vmem:[#allocation7 + $0x28] sm:$0xff]  ;;  %v3639_v41 = vld [vmem:[#allocation7 + $0x20] sm:$0xff] }
 0xa65   :  { %1478 = vrot.lane.b32.xlu0 %v1470_v42, %s3008_s22  ;;  %v2618_v46 = vmul.f32 -1.442695, %v1470_v42  ;;  %v3642_v42 = vld [vmem:[#allocation7 + $0x18] sm:$0xff] }
 0xa67   :  { %2758 = vpow2.f32 %v2618_v46  ;;  %v3654_v46 = vld [vmem:[#allocation5 + $0x78] sm:$0xff] }
 0xa6f   :  { %v2757_v47 = vpop.eup %2756 }
 0xa70   :  { %v1295_v29 = vmul.f32 %v2757_v47, %v3454_v35 }
 0xa74   :  { %v2759_v48 = vpop.eup %2758 }
 0xa75   :  { %v1474_v31 = vadd.f32 1.0, %v2759_v48 }
 0xa77   :  { %2760 = vrcp.f32 %v1474_v31 }
 0xa84   :  { %v2761_v33 = vpop.eup %2760 }
 0xa85   :  { %v1483_v34 = vmul.f32 %v2761_v33, %v3459_v20  ;;  %v3592_v20 = vld [vmem:[#allocation2 + $0x18] sm:$0xff] }
 0xad1   :  { %v1298_v49 = vpop.permute.xlu1 %1297 }
 0xad2   :  { %v1300_v53 = vmul.f32 %v2757_v47, %v1298_v49 }
 0xad4   :  { %1302 = vrot.lane.b32.xlu1 %v1300_v53, %s3008_s22 }
 0xad7   :  { %v1479_v27 = vpop.permute.xlu0 %1478 }
 0xad8   :  { %v1480_v28 = vrot.slane %v1479_v27, 2 }
 0xada   :  { %2762 = vtanh.f32 %v1480_v28 }
 0xae7   :  { %v2763_v32 = vpop.eup %2762 }
 0xae8   :  { %v1484_v30 = vmul.f32 %v2763_v32, %v2761_v33 }
 0xaea   :  { %1486 = vrot.lane.b32.xlu0 %v1484_v30, %s3008_s22 }
 0xb46   :  { %v1303_v36 = vpop.permute.xlu1 %1302 }
 0xb47   :  { %v3528_v50 = vadd.f32 %v1303_v36, %v1295_v29 }
 0xb49   :  { %2764 = vtanh.f32 %v3528_v50 }
 0xb56   :  { %v2765_v0 = vpop.eup %2764 }
 0xb57   :  { %1308 = vrot.lane.b32.xlu1 %v2765_v0, %s3008_s22  ;;  %v2623_v0 = vld [vmem:[%s3895_s0 + $0x14] sm:$0xf] }
 0xb5c   :  { %v1487_v22 = vpop.permute.xlu0 %1486 }
 0xb5d   :  { %v3533_v51 = vadd.f32 %v1487_v22, %v1483_v34 }
 0xb5f   :  { %2766 = vtanh.f32 %v3533_v51 }
 0xb60   :  { %2768 = vpow2.f32 %v2614_v24 }
 0xb6c   :  { %v2767_v52 = vpop.eup %2766 }
 0xb6d   :  { %1495 = vrot.lane.b32.xlu0 %v2767_v52, %s3008_s22  ;;  %v2769_v35 = vpop.eup %2768 }
 0xb6e   :  { %v1289_v1 = vadd.f32 1.0, %v2769_v35 }
 0xb70   :  { %2770 = vrcp.f32 %v1289_v1 }
 0xb7d   :  { %v2771_v2 = vpop.eup %2770 }
 0xbc9   :  { %v1309_v3 = vpop.permute.xlu1 %1308 }
 0xbca   :  { %v1311_v4 = vmul.f32 %v2771_v2, %v1309_v3 }
 0xbcc   :  { %2615 = vmatmul.mubr.msk.f32.vlgmr.msra.gmra.mxu0 %vm140_vm0, %v1311_v4 }
 0xbcd   :  { %1519 = vmatpush1.msra.mxu0 %v3192_v54  ;;  %1566 = vmatprep.mubr.f32.mxu0 %v3926_v25  ;;  %v3554_v54 = vld [vmem:[#allocation2 + $0x78] sm:$0xff] }
 0xbce   :  { %1520 = vmatprep.subr.mxu0 %v3196_v55  ;;  %v1492_v55 = vrot.slane %v2761_v33, 2 }
 0xbcf   :  { %1521 = vmatpush1.msra.mxu0 %v3201_v56 }
 0xbd0   :  { %1522 = vmatprep.subr.mxu0 %v3204_v57 }
 0xbd1   :  { %1523 = vmatpush1.msra.mxu0 %v3208_v58  ;;  %v3558_v58 = vld [vmem:[#allocation2 + $0x70] sm:$0xff] }
 0xbd2   :  { %1524 = vmatprep.subr.mxu0 %v3212_v59  ;;  %v3562_v59 = vld [vmem:[#allocation2 + $0x68] sm:$0xff] }
 0xbd3   :  { %1525 = vmatpush1.msra.mxu0 %v3215_v60  ;;  %v3565_v60 = vld [vmem:[#allocation2 + $0x60] sm:$0xff] }
 0xbd4   :  { %1526 = vmatprep.subr.mxu0 %v3218_v61  ;;  %v3568_v61 = vld [vmem:[#allocation2 + $0x58] sm:$0xff] }
 0xbd5   :  { %1527 = vmatpush1.msra.mxu0 %v3221_v62  ;;  %v3571_v62 = vld [vmem:[#allocation2 + $0x50] sm:$0xff] }
 0xbd6   :  { %1528 = vmatprep.subr.mxu0 %v3224_v63  ;;  %v3574_v63 = vld [vmem:[#allocation2 + $0x48] sm:$0xff] }
 0xbd7   :  { %1529 = vmatpush1.msra.mxu0 %v3227_v17  ;;  %v3577_v17 = vld [vmem:[#allocation2 + $0x40] sm:$0xff] }
 0xbd8   :  { %1530 = vmatprep.subr.mxu0 %v3230_v18  ;;  %v3580_v18 = vld [vmem:[#allocation2 + $0x38] sm:$0xff] }
 0xbd9   :  { %1531 = vmatpush1.msra.mxu0 %v3233_v19  ;;  %v3583_v19 = vld [vmem:[#allocation2 + $0x30] sm:$0xff] }
 0xbda   :  { %1532 = vmatprep.subr.mxu0 %v3236_v21  ;;  %v3586_v21 = vld [vmem:[#allocation2 + $0x28] sm:$0xff] }
 0xbdb   :  { %1533 = vmatpush1.msra.mxu0 %v3245_v26  ;;  %v3589_v26 = vld [vmem:[#allocation2 + $0x20] sm:$0xff] }
 0xbdc   :  { %1697 = vmatprep.subr.mxu0 %v3554_v54 }
 0xbdf   :  { %v1496_v56 = vpop.permute.xlu0 %1495 }
 0xbe0   :  { %v1498_v57 = vmul.f32 %v1496_v56, %v1492_v55 }
 0xbe2   :  { %2619 = vmatmul.mubr.msk.f32.vlgmr.msra.gmra.mxu0 %vm140_vm0, %v1498_v57 }
 0xbe3   :  { %1698 = vmatpush1.msra.mxu0 %v3558_v58  ;;  %1745 = vmatprep.mubr.f32.mxu0 %v3926_v25 }
 0xbe4   :  { %1699 = vmatprep.subr.mxu0 %v3562_v59 }
 0xbe5   :  { %1700 = vmatpush1.msra.mxu0 %v3565_v60 }
 0xbe6   :  { %1701 = vmatprep.subr.mxu0 %v3568_v61 }
 0xbe7   :  { %1702 = vmatpush1.msra.mxu0 %v3571_v62 }
 0xbe8   :  { %1703 = vmatprep.subr.mxu0 %v3574_v63 }
 0xbe9   :  { %1704 = vmatpush1.msra.mxu0 %v3577_v17 }
 0xbea   :  { %1705 = vmatprep.subr.mxu0 %v3580_v18 }
 0xbeb   :  { %1706 = vmatpush1.msra.mxu0 %v3583_v19 }
 0xbec   :  { %1707 = vmatprep.subr.mxu0 %v3586_v21 }
 0xbed   :  { %1708 = vmatpush1.msra.mxu0 %v3589_v26 }
 0xbee   :  { %1709 = vmatprep.subr.mxu0 %v3592_v20 }
 0xbef   :  { %1710 = vmatpush1.msra.mxu0 %v3595_v5 }
 0xbf0   :  { %1711 = vmatprep.subr.mxu0 %v3598_v6 }
 0xbf1   :  { %1712 = vmatpush1.msra.mxu0 %v3601_v7 }
 0xbf2   :  { %2624 = vmatmul.mubr.msk.f32.vlgmr.msra.gmra.mxu0 %vm140_vm0, %v1498_v57  ;;  %1917 = vmatprep.subr.mxu0 %v3605_v9 }
 0xbf3   :  { %1918 = vmatpush1.msra.mxu0 %v3608_v10  ;;  %1965 = vmatprep.mubr.f32.mxu0 %v3926_v25 }
 0xbf4   :  { %1919 = vmatprep.subr.mxu0 %v3612_v12 }
 0xbf5   :  { %1920 = vmatpush1.msra.mxu0 %v3615_v13 }
 0xbf6   :  { %1921 = vmatprep.subr.mxu0 %v3618_v14 }
 0xbf7   :  { %1922 = vmatpush1.msra.mxu0 %v3621_v15 }
 0xbf8   :  { %1923 = vmatprep.subr.mxu0 %v3624_v16 }
 0xbf9   :  { %1924 = vmatpush1.msra.mxu0 %v3627_v37 }
 0xbfa   :  { %1925 = vmatprep.subr.mxu0 %v3630_v38 }
 0xbfb   :  { %1926 = vmatpush1.msra.mxu0 %v3633_v39 }
 0xbfc   :  { %1927 = vmatprep.subr.mxu0 %v3636_v40 }
 0xbfd   :  { %1928 = vmatpush1.msra.mxu0 %v3639_v41 }
 0xbfe   :  { %1929 = vmatprep.subr.mxu0 %v3642_v42 }
 0xbff   :  { %1930 = vmatpush1.msra.mxu0 %v3645_v43 }
 0xc00   :  { %1931 = vmatprep.subr.mxu0 %v3648_v44 }
 0xc01   :  { %1932 = vmatpush1.msra.mxu0 %v3651_v45 }
 0xc02   :  { %2104 = vmatprep.subr.mxu0 %v3654_v46 }
 0xc8c   :  { %v1381_v47 = vpop.f32.mrf.mxu0 }
 0xc8d   :  { %v1382_v49 = vadd.f32 %v1381_v47, %v3944_v8 }
 0xc8e   :  { %v1383_v48 = vpop.f32.mrf.mxu0 }
 0xc8f   :  { %v1384_v31 = vadd.f32 %v1383_v48, %v3945_v11 }
 0xca2   :  { %v1568_v53 = vpop.f32.mrf.mxu0 }
 0xca3   :  { %v1573_v27 = vadd.f32 %v1568_v53, %v1382_v49 }
 0xca4   :  { %v1570_v28 = vpop.f32.mrf.mxu0 }
 0xca5   :  { %v1574_v33 = vadd.f32 %v1570_v28, %v1384_v31  ;;  %v2620_v52 = vmul.f32 -1.442695, %v1573_v27 }
 0xca7   :  { %2772 = vtanh.f32 %v1574_v33 }
 0xca8   :  { %2774 = vpow2.f32 %v2620_v52 }
 0xcb2   :  { %v1747_v32 = vpop.f32.mrf.mxu0 }
 0xcb4   :  { %v1749_v30 = vpop.f32.mrf.mxu0  ;;  %v2773_v29 = vpop.eup %2772 }
 0xcb5   :  { %v1754_v36 = vcombine.low %v1747_v32, %v1749_v30  ;;  %1590 = vrot.lane.b32.xlu1 %v2773_v29, %s3008_s22  ;;  %v2775_v24 = vpop.eup %2774 }
 0xcb6   :  { %v1581_v35 = vadd.f32 1.0, %v2775_v24 }
 0xcb7   :  { %v1761_v34 = vrot.slane %v1754_v36, %v3118_v23 }
 0xcb8   :  { %2776 = vrcp.f32 %v1581_v35 }
 0xcb9   :  { %v1763_v22 = vadd.f32 %v2623_v0, %v1761_v34  ;;  %v2621_v34 = vmul.f32 -1.442695, %v1574_v33  ;;  %v3685_v33 = vld [vmem:[#allocation5 + $0x60] sm:$0xff] }
 0xcbb   :  { %1771 = vrot.lane.b32.xlu0 %v1763_v22, %s3008_s22  ;;  %v2625_v1 = vmul.f32 -1.442695, %v1763_v22 }
 0xcbd   :  { %2778 = vpow2.f32 %v2625_v1  ;;  %v3678_v1 = vld [vmem:[#allocation5 + $0x70] sm:$0xff] }
 0xcc5   :  { %v2777_v2 = vpop.eup %2776 }
 0xcc6   :  { %v1588_v31 = vmul.f32 %v2777_v2, %v3528_v50 }
 0xcca   :  { %v2779_v3 = vpop.eup %2778 }
 0xccb   :  { %v1767_v56 = vadd.f32 1.0, %v2779_v3  ;;  %v3691_v3 = vld [vmem:[#allocation5 + $0x50] sm:$0xff] }
 0xccd   :  { %2780 = vrcp.f32 %v1767_v56  ;;  %v3700_v56 = vld [vmem:[#allocation5 + $0x38] sm:$0xff] }
 0xcda   :  { %v2781_v48 = vpop.eup %2780 }
 0xcdb   :  { %v1776_v30 = vmul.f32 %v2781_v48, %v3533_v51  ;;  %v3682_v51 = vld [vmem:[#allocation5 + $0x68] sm:$0xff] }
 0xd27   :  { %v1591_v4 = vpop.permute.xlu1 %1590 }
 0xd28   :  { %v1593_v55 = vmul.f32 %v2777_v2, %v1591_v4  ;;  %v3688_v2 = vld [vmem:[#allocation5 + $0x58] sm:$0xff]  ;;  %v3694_v4 = vld [vmem:[#allocation5 + $0x48] sm:$0xff] }
 0xd2a   :  { %1595 = vrot.lane.b32.xlu1 %v1593_v55, %s3008_s22  ;;  %v3697_v55 = vld [vmem:[#allocation5 + $0x40] sm:$0xff] }
 0xd2d   :  { %v1772_v57 = vpop.permute.xlu0 %1771 }
 0xd2e   :  { %v1773_v47 = vrot.slane %v1772_v57, 2  ;;  %v3703_v57 = vld [vmem:[#allocation5 + $0x30] sm:$0xff] }
 0xd30   :  { %2782 = vtanh.f32 %v1773_v47  ;;  %v3706_v47 = vld [vmem:[#allocation5 + $0x28] sm:$0xff] }
 0xd3d   :  { %v2783_v49 = vpop.eup %2782 }
 0xd3e   :  { %v1777_v53 = vmul.f32 %v2783_v49, %v2781_v48  ;;  %v3709_v49 = vld [vmem:[#allocation5 + $0x20] sm:$0xff] }
 0xd40   :  { %1779 = vrot.lane.b32.xlu0 %v1777_v53, %s3008_s22  ;;  %v3712_v53 = vld [vmem:[#allocation5 + $0x18] sm:$0xff] }
 0xd9c   :  { %v1596_v27 = vpop.permute.xlu1 %1595 }
 0xd9d   :  { %v3668_v28 = vadd.f32 %v1596_v27, %v1588_v31  ;;  %v3715_v31 = vld [vmem:[#allocation5 + $0x10] sm:$0xff]  ;;  %v3718_v27 = vld [vmem:[#allocation5 + $0x8] sm:$0xff] }
 0xd9f   :  { %2784 = vtanh.f32 %v3668_v28 }
 0xdac   :  { %v2785_v32 = vpop.eup %2784 }
 0xdad   :  { %1601 = vrot.lane.b32.xlu1 %v2785_v32, %s3008_s22  ;;  %v3721_v32 = vld [vmem:[#allocation5] sm:$0xff] }
 0xdb2   :  { %v1780_v29 = vpop.permute.xlu0 %1779 }
 0xdb3   :  { %v3673_v36 = vadd.f32 %v1780_v29, %v1776_v30  ;;  %v1785_v30 = vrot.slane %v2781_v48, 2 }
 0xdb5   :  { %2786 = vtanh.f32 %v3673_v36 }
 0xdb6   :  { %2788 = vpow2.f32 %v2621_v34 }
 0xdc2   :  { %v2787_v0 = vpop.eup %2786 }
 0xdc3   :  { %1788 = vrot.lane.b32.xlu0 %v2787_v0, %s3008_s22  ;;  %v2789_v50 = vpop.eup %2788 }
 0xdc4   :  { %v1582_v22 = vadd.f32 1.0, %v2789_v50 }
 0xdc6   :  { %2790 = vrcp.f32 %v1582_v22 }
 0xdd3   :  { %v2791_v52 = vpop.eup %2790 }
 0xe1f   :  { %v1602_v24 = vpop.permute.xlu1 %1601 }
 0xe20   :  { %v1604_v35 = vmul.f32 %v2791_v52, %v1602_v24 }
 0xe22   :  { %2622 = vmatmul.mubr.msk.f32.vlgmr.msra.gmra.mxu1 %vm140_vm0, %v1604_v35 }
 0xe23   :  { %1812 = vmatpush1.msra.mxu1 %v3678_v1  ;;  %1859 = vmatprep.mubr.f32.mxu1 %v3926_v25 }
 0xe24   :  { %1813 = vmatprep.subr.mxu1 %v3682_v51 }
 0xe25   :  { %1814 = vmatpush1.msra.mxu1 %v3685_v33 }
 0xe26   :  { %1815 = vmatprep.subr.mxu1 %v3688_v2 }
 0xe27   :  { %1816 = vmatpush1.msra.mxu1 %v3691_v3 }
 0xe28   :  { %1817 = vmatprep.subr.mxu1 %v3694_v4 }
 0xe29   :  { %1818 = vmatpush1.msra.mxu1 %v3697_v55 }
 0xe2a   :  { %1819 = vmatprep.subr.mxu1 %v3700_v56 }
 0xe2b   :  { %1820 = vmatpush1.msra.mxu1 %v3703_v57 }
 0xe2c   :  { %1821 = vmatprep.subr.mxu1 %v3706_v47 }
 0xe2d   :  { %1822 = vmatpush1.msra.mxu1 %v3709_v49 }
 0xe2e   :  { %1823 = vmatprep.subr.mxu1 %v3712_v53 }
 0xe2f   :  { %1824 = vmatpush1.msra.mxu1 %v3715_v31 }
 0xe30   :  { %1825 = vmatprep.subr.mxu1 %v3718_v27 }
 0xe31   :  { %1826 = vmatpush1.msra.mxu1 %v3721_v32 }
 0xe32   :  { %1990 = vmatprep.subr.mxu1 %v3554_v54 }
 0xe35   :  { %v1789_v29 = vpop.permute.xlu0 %1788 }
 0xe36   :  { %v1791_v0 = vmul.f32 %v1789_v29, %v1785_v30 }
 0xe38   :  { %2626 = vmatmul.mubr.msk.f32.vlgmr.msra.gmra.mxu1 %vm140_vm0, %v1791_v0 }
 0xe39   :  { %1991 = vmatpush1.msra.mxu1 %v3558_v58  ;;  %2038 = vmatprep.mubr.f32.mxu1 %v3926_v25 }
 0xe3a   :  { %1992 = vmatprep.subr.mxu1 %v3562_v59 }
 0xe3b   :  { %1993 = vmatpush1.msra.mxu1 %v3565_v60 }
 0xe3c   :  { %1994 = vmatprep.subr.mxu1 %v3568_v61 }
 0xe3d   :  { %1995 = vmatpush1.msra.mxu1 %v3571_v62 }
 0xe3e   :  { %1996 = vmatprep.subr.mxu1 %v3574_v63 }
 0xe3f   :  { %1997 = vmatpush1.msra.mxu1 %v3577_v17 }
 0xe40   :  { %1998 = vmatprep.subr.mxu1 %v3580_v18 }
 0xe41   :  { %1999 = vmatpush1.msra.mxu1 %v3583_v19 }
 0xe42   :  { %2000 = vmatprep.subr.mxu1 %v3586_v21 }
 0xe43   :  { %2001 = vmatpush1.msra.mxu1 %v3589_v26 }
 0xe44   :  { %2002 = vmatprep.subr.mxu1 %v3592_v20 }
 0xe45   :  { %2003 = vmatpush1.msra.mxu1 %v3595_v5 }
 0xe46   :  { %2004 = vmatprep.subr.mxu1 %v3598_v6 }
 0xe47   :  { %2005 = vmatpush1.msra.mxu1 %v3601_v7 }
 0xe48   :  { %2631 = vmatmul.mubr.msk.f32.vlgmr.msra.gmra.mxu1 %vm140_vm0, %v1791_v0  ;;  %2210 = vmatprep.subr.mxu1 %v3605_v9 }
 0xe49   :  { %2211 = vmatpush1.msra.mxu1 %v3608_v10  ;;  %2258 = vmatprep.mubr.f32.mxu1 %v3926_v25 }
 0xe4a   :  { %2212 = vmatprep.subr.mxu1 %v3612_v12 }
 0xe4b   :  { %2213 = vmatpush1.msra.mxu1 %v3615_v13 }
 0xe4c   :  { %2214 = vmatprep.subr.mxu1 %v3618_v14 }
 0xe4d   :  { %2215 = vmatpush1.msra.mxu1 %v3621_v15 }
 0xe4e   :  { %2216 = vmatprep.subr.mxu1 %v3624_v16 }
 0xe4f   :  { %2217 = vmatpush1.msra.mxu1 %v3627_v37 }
 0xe50   :  { %2218 = vmatprep.subr.mxu1 %v3630_v38 }
 0xe51   :  { %2219 = vmatpush1.msra.mxu1 %v3633_v39 }
 0xe52   :  { %2220 = vmatprep.subr.mxu1 %v3636_v40 }
 0xe53   :  { %2221 = vmatpush1.msra.mxu1 %v3639_v41 }
 0xe54   :  { %2222 = vmatprep.subr.mxu1 %v3642_v42  ;;  %v2630_v42 = vld [vmem:[%s3895_s0 + $0x18] sm:$0xf] }
 0xe55   :  { %2223 = vmatpush1.msra.mxu1 %v3645_v43 }
 0xe56   :  { %2224 = vmatprep.subr.mxu1 %v3648_v44 }
 0xe57   :  { %2225 = vmatpush1.msra.mxu1 %v3651_v45 }
 0xe58   :  { %2397 = vmatprep.subr.mxu1 %v3654_v46 }
 0xee2   :  { %v1674_v9 = vpop.f32.mrf.mxu1 }
 0xee3   :  { %v1675_v12 = vadd.f32 %v1674_v9, %v3944_v8 }
 0xee4   :  { %v1676_v10 = vpop.f32.mrf.mxu1 }
 0xee5   :  { %v1677_v14 = vadd.f32 %v1676_v10, %v3945_v11 }
 0xef8   :  { %v1861_v13 = vpop.f32.mrf.mxu1 }
 0xef9   :  { %v1866_v15 = vadd.f32 %v1861_v13, %v1675_v12 }
 0xefa   :  { %v1863_v16 = vpop.f32.mrf.mxu1 }
 0xefb   :  { %v1867_v37 = vadd.f32 %v1863_v16, %v1677_v14  ;;  %v2627_v45 = vmul.f32 -1.442695, %v1866_v15 }
 0xefd   :  { %2792 = vtanh.f32 %v1867_v37 }
 0xefe   :  { %2794 = vpow2.f32 %v2627_v45 }
 0xf08   :  { %v2040_v38 = vpop.f32.mrf.mxu1 }
 0xf0a   :  { %v2042_v39 = vpop.f32.mrf.mxu1  ;;  %v2793_v40 = vpop.eup %2792 }
 0xf0b   :  { %v2047_v41 = vcombine.low %v2040_v38, %v2042_v39  ;;  %1883 = vrot.lane.b32.xlu1 %v2793_v40, %s3008_s22  ;;  %v2795_v46 = vpop.eup %2794 }
 0xf0c   :  { %v1874_v48 = vadd.f32 1.0, %v2795_v46 }
 0xf0d   :  { %v2054_v43 = vrot.slane %v2047_v41, %v3118_v23  ;;  %v2628_v41 = vmul.f32 -1.442695, %v1867_v37 }
 0xf0e   :  { %2796 = vrcp.f32 %v1874_v48 }
 0xf0f   :  { %v2056_v44 = vadd.f32 %v2630_v42, %v2054_v43 }
 0xf11   :  { %2064 = vrot.lane.b32.xlu0 %v2056_v44, %s3008_s22  ;;  %v2632_v34 = vmul.f32 -1.442695, %v2056_v44 }
 0xf13   :  { %2798 = vpow2.f32 %v2632_v34 }
 0xf1b   :  { %v2797_v50 = vpop.eup %2796 }
 0xf1c   :  { %v1881_v12 = vmul.f32 %v2797_v50, %v3668_v28 }
 0xf20   :  { %v2799_v22 = vpop.eup %2798 }
 0xf21   :  { %v2060_v35 = vadd.f32 1.0, %v2799_v22 }
 0xf23   :  { %2800 = vrcp.f32 %v2060_v35 }
 0xf30   :  { %v2801_v0 = vpop.eup %2800 }
 0xf31   :  { %v2069_v16 = vmul.f32 %v2801_v0, %v3673_v36  ;;  %v2078_v36 = vrot.slane %v2801_v0, 2 }
 0xf7d   :  { %v1884_v52 = vpop.permute.xlu1 %1883 }
 0xf7e   :  { %v1886_v24 = vmul.f32 %v2797_v50, %v1884_v52 }
 0xf80   :  { %1888 = vrot.lane.b32.xlu1 %v1886_v24, %s3008_s22 }
 0xf83   :  { %v2065_v30 = vpop.permute.xlu0 %2064 }
 0xf84   :  { %v2066_v29 = vrot.slane %v2065_v30, 2 }
 0xf86   :  { %2802 = vtanh.f32 %v2066_v29 }
 0xf93   :  { %v2803_v9 = vpop.eup %2802 }
 0xf94   :  { %v2070_v10 = vmul.f32 %v2803_v9, %v2801_v0 }
 0xf96   :  { %2072 = vrot.lane.b32.xlu0 %v2070_v10, %s3008_s22 }
 0xff2   :  { %v1889_v13 = vpop.permute.xlu1 %1888 }
 0xff3   :  { %v3772_v14 = vadd.f32 %v1889_v13, %v1881_v12 }
 0xff5   :  { %2804 = vtanh.f32 %v3772_v14 }
0x1002   :  { %v2805_v15 = vpop.eup %2804 }
0x1003   :  { %1894 = vrot.lane.b32.xlu1 %v2805_v15, %s3008_s22 }
0x1008   :  { %v2073_v38 = vpop.permute.xlu0 %2072 }
0x1009   :  { %v3777_v39 = vadd.f32 %v2073_v38, %v2069_v16 }
0x100b   :  { %2806 = vtanh.f32 %v3777_v39 }
0x100c   :  { %2808 = vpow2.f32 %v2628_v41 }
0x1018   :  { %v2807_v40 = vpop.eup %2806 }
0x1019   :  { %2081 = vrot.lane.b32.xlu0 %v2807_v40, %s3008_s22  ;;  %v2809_v28 = vpop.eup %2808 }
0x101a   :  { %v1875_v42 = vadd.f32 1.0, %v2809_v28 }
0x101c   :  { %2810 = vrcp.f32 %v1875_v42 }
0x1029   :  { %v2811_v43 = vpop.eup %2810 }
0x1075   :  { %v1895_v44 = vpop.permute.xlu1 %1894 }
0x1076   :  { %v1897_v45 = vmul.f32 %v2811_v43, %v1895_v44 }
0x1078   :  { %2629 = vmatmul.mubr.msk.f32.vlgmr.msra.gmra.mxu0 %vm140_vm0, %v1897_v45 }
0x1079   :  { %2105 = vmatpush1.msra.mxu0 %v3678_v1  ;;  %2152 = vmatprep.mubr.f32.mxu0 %v3926_v25 }
0x107a   :  { %2106 = vmatprep.subr.mxu0 %v3682_v51 }
0x107b   :  { %2107 = vmatpush1.msra.mxu0 %v3685_v33 }
0x107c   :  { %2108 = vmatprep.subr.mxu0 %v3688_v2 }
0x107d   :  { %2109 = vmatpush1.msra.mxu0 %v3691_v3 }
0x107e   :  { %2110 = vmatprep.subr.mxu0 %v3694_v4 }
0x107f   :  { %2111 = vmatpush1.msra.mxu0 %v3697_v55 }
0x1080   :  { %2112 = vmatprep.subr.mxu0 %v3700_v56 }
0x1081   :  { %2113 = vmatpush1.msra.mxu0 %v3703_v57 }
0x1082   :  { %2114 = vmatprep.subr.mxu0 %v3706_v47 }
0x1083   :  { %2115 = vmatpush1.msra.mxu0 %v3709_v49 }
0x1084   :  { %2116 = vmatprep.subr.mxu0 %v3712_v53 }
0x1085   :  { %2117 = vmatpush1.msra.mxu0 %v3715_v31 }
0x1086   :  { %2118 = vmatprep.subr.mxu0 %v3718_v27 }
0x1087   :  { %2119 = vmatpush1.msra.mxu0 %v3721_v32 }
0x1088   :  { %2283 = vmatprep.subr.mxu0 %v3554_v54 }
0x108b   :  { %v2082_v37 = vpop.permute.xlu0 %2081 }
0x108c   :  { %v2084_v46 = vmul.f32 %v2082_v37, %v2078_v36 }
0x108e   :  { %2633 = vmatmul.mubr.msk.f32.vlgmr.msra.gmra.mxu0 %vm140_vm0, %v2084_v46 }
0x108f   :  { %2284 = vmatpush1.msra.mxu0 %v3558_v58  ;;  %2331 = vmatprep.mubr.f32.mxu0 %v3926_v25 }
0x1090   :  { %2285 = vmatprep.subr.mxu0 %v3562_v59 }
0x1091   :  { %2286 = vmatpush1.msra.mxu0 %v3565_v60 }
0x1092   :  { %2287 = vmatprep.subr.mxu0 %v3568_v61 }
0x1093   :  { %2288 = vmatpush1.msra.mxu0 %v3571_v62 }
0x1094   :  { %2289 = vmatprep.subr.mxu0 %v3574_v63 }
0x1095   :  { %2290 = vmatpush1.msra.mxu0 %v3577_v17 }
0x1096   :  { %2291 = vmatprep.subr.mxu0 %v3580_v18 }
0x1097   :  { %2292 = vmatpush1.msra.mxu0 %v3583_v19 }
0x1098   :  { %2293 = vmatprep.subr.mxu0 %v3586_v21 }
0x1099   :  { %2294 = vmatpush1.msra.mxu0 %v3589_v26 }
0x109a   :  { %2295 = vmatprep.subr.mxu0 %v3592_v20  ;;  %v2637_v20 = vld [vmem:[%s3895_s0 + $0x1c] sm:$0xf] }
0x109b   :  { %2296 = vmatpush1.msra.mxu0 %v3595_v5 }
0x109c   :  { %2297 = vmatprep.subr.mxu0 %v3598_v6 }
0x109d   :  { %2298 = vmatpush1.msra.mxu0 %v3601_v7 }
0x109e   :  { %2638 = vmatmul.mubr.msk.f32.vlgmr.msra.gmra.mxu0 %vm140_vm0, %v2084_v46  ;;  %2654 = vmatprep.subr.mxu0 %v3926_v25 }
0x109f   :  { %2670 = vmatprep.mubr.msk.f32.mxu0 %vm3009_vm1, %v3926_v25 }
0x1138   :  { %v1967_v54 = vpop.f32.mrf.mxu0 }
0x1139   :  { %v1968_v59 = vadd.f32 %v1967_v54, %v3944_v8  ;;  %v2489_v54 = vld [vmem:[%s3900_s5 + $0x28] sm:$0xff] }
0x113a   :  { %v1969_v58 = vpop.f32.mrf.mxu0 }
0x113b   :  { %v1970_v61 = vadd.f32 %v1969_v58, %v3945_v11  ;;  %v2488_v58 = vld [vmem:[%s3900_s5 + $0x20] sm:$0xff] }
0x114e   :  { %v2154_v60 = vpop.f32.mrf.mxu0 }
0x114f   :  { %v2159_v62 = vadd.f32 %v2154_v60, %v1968_v59  ;;  %v2487_v59 = vld [vmem:[%s3900_s5 + $0x18] sm:$0xff]  ;;  %v2486_v60 = vld [vmem:[%s3900_s5 + $0x10] sm:$0xff] }
0x1150   :  { %v2156_v63 = vpop.f32.mrf.mxu0 }
0x1151   :  { %v2160_v17 = vadd.f32 %v2156_v63, %v1970_v61  ;;  %v2634_v7 = vmul.f32 -1.442695, %v2159_v62  ;;  %v2485_v61 = vld [vmem:[%s3900_s5 + $0x8] sm:$0xff] }
0x1153   :  { %2812 = vtanh.f32 %v2160_v17  ;;  %v2635_v42 = vmul.f32 -1.442695, %v2160_v17 }
0x1154   :  { %2814 = vpow2.f32 %v2634_v7 }
0x115e   :  { %v2333_v18 = vpop.f32.mrf.mxu0 }
0x1160   :  { %v2335_v19 = vpop.f32.mrf.mxu0  ;;  %v2813_v21 = vpop.eup %2812 }
0x1161   :  { %v2340_v26 = vcombine.low %v2333_v18, %v2335_v19  ;;  %2176 = vrot.lane.b32.xlu0 %v2813_v21, %s3008_s22  ;;  %v2815_v48 = vpop.eup %2814  ;;  %v2484_v18 = vld [vmem:[%s3900_s5] sm:$0xff] }
0x1162   :  { %v2167_v34 = vadd.f32 1.0, %v2815_v48  ;;  %v2643_v48 = vld [vmem:[#allocation8] ss:$0 sm:$0xff] }
0x1163   :  { %v2347_v5 = vrot.slane %v2340_v26, %v3118_v23 }
0x1164   :  { %2816 = vrcp.f32 %v2167_v34 }
0x1165   :  { %v2349_v6 = vadd.f32 %v2637_v20, %v2347_v5 }
0x1167   :  { %2357 = vrot.lane.b32.xlu1 %v2349_v6, %s3008_s22  ;;  %v2639_v50 = vmul.f32 -1.442695, %v2349_v6 }
0x1169   :  { %2818 = vpow2.f32 %v2639_v50 }
0x1171   :  { %v2817_v22 = vpop.eup %2816 }
0x1172   :  { %v2174_v12 = vmul.f32 %v2817_v22, %v3772_v14 }
0x1176   :  { %v2819_v52 = vpop.eup %2818 }
0x1177   :  { %v2353_v30 = vadd.f32 1.0, %v2819_v52 }
0x1179   :  { %2820 = vrcp.f32 %v2353_v30 }
0x1186   :  { %v2821_v23 = vpop.eup %2820 }
0x1187   :  { %v2362_v38 = vmul.f32 %v2821_v23, %v3777_v39 }
0x11d3   :  { %v2177_v24 = vpop.permute.xlu0 %2176 }
0x11d4   :  { %v2179_v35 = vmul.f32 %v2817_v22, %v2177_v24 }
0x11d6   :  { %2181 = vrot.lane.b32.xlu1 %v2179_v35, %s3008_s22 }
0x11d9   :  { %v2358_v29 = vpop.permute.xlu1 %2357 }
0x11da   :  { %v2359_v0 = vrot.slane %v2358_v29, 2 }
0x11dc   :  { %2822 = vtanh.f32 %v2359_v0 }
0x11e9   :  { %v2823_v9 = vpop.eup %2822 }
0x11ea   :  { %v2363_v10 = vmul.f32 %v2823_v9, %v2821_v23 }
0x11ec   :  { %2365 = vrot.lane.b32.xlu0 %v2363_v10, %s3008_s22 }
0x1248   :  { %v2182_v13 = vpop.permute.xlu1 %2181 }
0x1249   :  { %v3829_v15 = vadd.f32 %v2182_v13, %v2174_v12 }
0x124b   :  { %2824 = vtanh.f32 %v3829_v15 }
0x1258   :  { %v2825_v16 = vpop.eup %2824 }
0x1259   :  { %2187 = vrot.lane.b32.xlu1 %v2825_v16, %s3008_s22 }
0x125e   :  { %v2366_v40 = vpop.permute.xlu0 %2365 }
0x125f   :  { %v2368_v41 = vadd.f32 %v2366_v40, %v2362_v38 }
0x1261   :  { %2826 = vtanh.f32 %v2368_v41 }
0x1262   :  { %2828 = vpow2.f32 %v2635_v42 }
0x126e   :  { %v2827_v28 = vpop.eup %2826 }
0x126f   :  { %2374 = vrot.lane.b32.xlu0 %v2827_v28, %s3008_s22  ;;  %v2829_v43 = vpop.eup %2828 }
0x1270   :  { %v2168_v14 = vadd.f32 1.0, %v2829_v43 }
0x1272   :  { %2830 = vrcp.f32 %v2168_v14 }
0x127f   :  { %v2831_v44 = vpop.eup %2830 }
0x12cb   :  { %v2188_v45 = vpop.permute.xlu1 %2187 }
0x12cc   :  { %v2190_v36 = vmul.f32 %v2831_v44, %v2188_v45 }
0x12ce   :  { %2636 = vmatmul.mubr.msk.f32.vlgmr.msra.gmra.mxu1 %vm140_vm0, %v2190_v36 }
0x12cf   :  { %2398 = vmatpush1.msra.mxu1 %v3678_v1  ;;  %2445 = vmatprep.mubr.f32.mxu1 %v3926_v25  ;;  %v2371_v1 = vrot.slane %v2821_v23, 2 }
0x12d0   :  { %2399 = vmatprep.subr.mxu1 %v3682_v51 }
0x12d1   :  { %2400 = vmatpush1.msra.mxu1 %v3685_v33 }
0x12d2   :  { %2401 = vmatprep.subr.mxu1 %v3688_v2 }
0x12d3   :  { %2402 = vmatpush1.msra.mxu1 %v3691_v3 }
0x12d4   :  { %2403 = vmatprep.subr.mxu1 %v3694_v4 }
0x12d5   :  { %2404 = vmatpush1.msra.mxu1 %v3697_v55 }
0x12d6   :  { %2405 = vmatprep.subr.mxu1 %v3700_v56 }
0x12d7   :  { %2406 = vmatpush1.msra.mxu1 %v3703_v57 }
0x12d8   :  { %2407 = vmatprep.subr.mxu1 %v3706_v47 }
0x12d9   :  { %2408 = vmatpush1.msra.mxu1 %v3709_v49 }
0x12da   :  { %2409 = vmatprep.subr.mxu1 %v3712_v53 }
0x12db   :  { %2410 = vmatpush1.msra.mxu1 %v3715_v31 }
0x12dc   :  { %2411 = vmatprep.subr.mxu1 %v3718_v27 }
0x12dd   :  { %2412 = vmatpush1.msra.mxu1 %v3721_v32 }
0x12e1   :  { %v2375_v51 = vpop.permute.xlu0 %2374 }
0x12e2   :  { %v2377_v33 = vmul.f32 %v2375_v51, %v2371_v1 }
0x12e4   :  { %2640 = vmatmul.mubr.msk.f32.vlgmr.msra.gmra.mxu1 %vm140_vm0, %v2377_v33 }
0x138e   :  { %v2260_v2 = vpop.f32.mrf.mxu1 }
0x138f   :  { %v2261_v4 = vadd.f32 %v2260_v2, %v3944_v8  ;;  %v2491_v8 = vld [vmem:[%s3900_s5 + $0x38] sm:$0xff] }
0x1390   :  { %v2262_v3 = vpop.f32.mrf.mxu1  ;;  %2655 = vmatpush3.msra.mxu0 %v2491_v8 }
0x1391   :  { %v2263_v56 = vadd.f32 %v2262_v3, %v3945_v11  ;;  %v2490_v11 = vld [vmem:[%s3900_s5 + $0x30] sm:$0xff]  ;;  %2656 = vmatprep.subr.mxu0 %v3926_v25  ;;  %s2579_s5 = sshll.u32 %s3010_s26, 4  ;;  %s2580_s5 = int_to_ptr.vmem [resolvable:$true] %s2579_s5 }
0x1392   :  { %2657 = vmatpush3.msra.mxu0 %v2490_v11  ;;  %s2972_s27 = scalar_lea.vmem %s2580_s5, 32  ;;  %p2977_p7 = scmp.lt.s32.totalorder %s2580_s5, %s2580_s5 }
0x1393   :  { %2658 = vmatprep.subr.mxu0 %v3926_v25  ;;  %p2973_p6 = scmp.ne.s32.totalorder %s2580_s5, %s2972_s27  ;;  %p2978_p8 = scmp.lt.s32.totalorder %s2972_s27, %s2972_s27 }
0x1394   :  { %2659 = vmatpush3.msra.mxu0 %v2489_v54 }
0x1395   :  { %2660 = vmatprep.subr.mxu0 %v3926_v25  ;;  %p2979_p9 = por %p2978_p8, %p2977_p7 }
0x1396   :  { %2661 = vmatpush3.msra.mxu0 %v2488_v58 }
0x1397   :  { %2662 = vmatprep.subr.mxu0 %v3926_v25  ;;  %p2980_p10 = pnand %p2979_p9, %p2973_p6 }
0x1398   :  { %2663 = vmatpush3.msra.mxu0 %v2487_v59 }
0x1399   :  { %2664 = vmatprep.subr.mxu0 %v3926_v25 }
0x139a   :  { %2665 = vmatpush3.msra.mxu0 %v2486_v60 }
0x139b   :  { %2666 = vmatprep.subr.mxu0 %v3926_v25 }
0x139c   :  { %2667 = vmatpush3.msra.mxu0 %v2485_v61 }
0x139d   :  { %2668 = vmatprep.subr.mxu0 %v3926_v25 }
0x139e   :  { %2669 = vmatpush3.msra.mxu0 %v2484_v18 }
0x13a4   :  { %v2447_v55 = vpop.f32.mrf.mxu1 }
0x13a5   :  { %v2452_v57 = vadd.f32 %v2447_v55, %v2261_v4 }
0x13a6   :  { %v2449_v47 = vpop.f32.mrf.mxu1 }
0x13a7   :  { %v2453_v49 = vadd.f32 %v2449_v47, %v2263_v56  ;;  %v2641_v31 = vmul.f32 -1.442695, %v2452_v57 }
0x13a9   :  { %2832 = vtanh.f32 %v2453_v49  ;;  %v2642_v21 = vmul.f32 -1.442695, %v2453_v49 }
0x13aa   :  { %2834 = vpow2.f32 %v2641_v31 }
0x13b6   :  { %v2833_v53 = vpop.eup %2832 }
0x13b7   :  { %2469 = vrot.lane.b32.xlu1 %v2833_v53, %s3008_s22  ;;  %v2835_v27 = vpop.eup %2834 }
0x13b8   :  { %v2460_v32 = vadd.f32 1.0, %v2835_v27 }
0x13ba   :  { %2836 = vrcp.f32 %v2460_v32 }
0x13c7   :  { %v2837_v39 = vpop.eup %2836 }
0x13c8   :  { %v2467_v62 = vmul.f32 %v2837_v39, %v3829_v15 }
0x1429   :  { %v2470_v37 = vpop.permute.xlu1 %2469 }
0x142a   :  { %v2472_v46 = vmul.f32 %v2837_v39, %v2470_v37 }
0x142c   :  { %2474 = vrot.lane.b32.xlu0 %v2472_v46, %s3008_s22 }
0x149e   :  { %v2475_v63 = vpop.permute.xlu0 %2474 }
0x149f   :  { %v2477_v17 = vadd.f32 %v2475_v63, %v2467_v62 }
0x14a1   :  { %2838 = vtanh.f32 %v2477_v17 }
0x14a2   :  { %2840 = vpow2.f32 %v2642_v21 }
0x14ae   :  { %v2839_v19 = vpop.eup %2838 }
0x14af   :  { %2480 = vrot.lane.b32.xlu1 %v2839_v19, %s3008_s22  ;;  %v2841_v26 = vpop.eup %2840 }
0x14b0   :  { %v2461_v20 = vadd.f32 1.0, %v2841_v26 }
0x14b2   :  { %2842 = vrcp.f32 %v2461_v20 }
0x14bf   :  { %v2843_v5 = vpop.eup %2842 }
0x1521   :  { %v2481_v6 = vpop.permute.xlu1 %2480 }
0x1522   :  { %v2483_v7 = vmul.f32 %v2843_v5, %v2481_v6 }
0x1524   :  { %2671 = vmatmul.mubr.msk.f32.vlgmr.msra.gmra.mxu0 %vm140_vm0, %v2483_v7 }
0x15e4   :  { %v2568_v34 = vpop.f32.mrf.mxu0 }
0x15e5   :  { %v2569_v50 = vadd.f32 %v2643_v48, %v2568_v34 }
0x15e6   :  { %v2672_v25 = vpop.f32.mrf.mxu0 }
0x15e7   :  { %2572 = vst [vmem:[#allocation10] sm:$0x3] %v2569_v50 }
0x15e8   :  { %2983 = shalt.err (!%p2980_p10)
}
0x15e9   :  { %2582 = dma.vmem_to_hbm [thread:$0]  %s2580_s5, 32, %s3902_s7, [#allocation4]  }
0x15ea   :  { %2998 = dma.done.wait [#allocation4], 32  }
0x15eb   :  { %2999 = vsyncadd [#allocation4], 4294967264 }
0x15ec   :  { %2586 = vsyncpa [#allocation3], 1 }
0x15ed   :  { %2587 = vsyncpa [#allocation6], 1 }
0x15ee   :  { %2588 = vsyncpa [#allocation9], 1 }
0x15ef   :  { %2589 = vsyncpa [#allocation4], 1 }

</bundles_post_ra>
